<compile_context>
chip_gen: v7x
topology: tpu7x:2x2x1
jax: 0.10.0
libtpu: 0.0.40
codegen_flags: <defaults>
</compile_context>

<pallas_src>
import math
import jax
import jax.numpy as jnp
from jax import lax
from jax.experimental import pallas as pl
from jax.experimental.pallas import tpu as pltpu

LAMBDA_ATTENTION = 0.33
LAMBDA_DISTANCE = 0.33
LAMBDA_ADJACENCY = 1.0 - LAMBDA_ATTENTION - LAMBDA_DISTANCE
EPS = 1e-6
NEG_INF = 1e12  # matches torch masked_fill(-inf=1e12)


def _pick_query_tile(S):
    """Largest query tile that is a multiple of 8 and keeps >=2 grid steps for big S."""
    if S <= 128:
        return S
    for cand in (128, 64, 32, 16, 8):
        if S % cand == 0:
            return cand
    return S  # S not a multiple of 8: fall back to the full (untiled) query axis


def _make_kernel(return_attention):
    def kernel(q_ref, k_ref, v_ref, mask_ref, adj_ref, dist_ref, *out_refs):
        out_ref = out_refs[0]

        q = q_ref[0]            # [H, TQ, D]
        k = k_ref[0]            # [H, S,  D]
        v = v_ref[0]            # [H, S,  D]
        mask = mask_ref[0, 0]   # [S]
        adj = adj_ref[0]        # [TQ, S]
        dist = dist_ref[0]      # [TQ, S]

        H, S, D = k.shape
        key_valid = (mask != 0.0)[None, :]                               # [1, S]

        # ---- head-independent terms: computed once per (batch, q-tile) ----
        # adjacency: row-normalize (EUP approximate reciprocal; feeds p_w only).
        p_adj = adj * pl.reciprocal(
            jnp.sum(adj, axis=-1, keepdims=True) + EPS, approx=True)
        # distance kernel: softmax(-dist) with masked key columns -> probability 0.
        neg_d = jnp.where(key_valid, -dist, -NEG_INF)
        d_exp = jnp.exp(neg_d - jnp.max(neg_d, axis=-1, keepdims=True))
        p_dist = d_exp * pl.reciprocal(
            jnp.sum(d_exp, axis=-1, keepdims=True), approx=True)
        base = LAMBDA_DISTANCE * p_dist + LAMBDA_ADJACENCY * p_adj        # [TQ, S] f32

        # ---- attention scores: bf16 MXU operands, f32 accumulation ----
        # 1/sqrt(D) folded into q before the dot (scales H*TQ*D, not H*TQ*S).
        q_h = (q * (1.0 / math.sqrt(D))).astype(jnp.bfloat16)
        k_h = k.astype(jnp.bfloat16)
        scores = lax.dot_general(
            q_h, k_h, dimension_numbers=(((2,), (2,)), ((0,), (0,))),
            preferred_element_type=jnp.float32)                          # [H, TQ, S]
        scores = jnp.where(key_valid[None], scores, -NEG_INF)
        # At realistic S the single EUP slot (these exps) is the saturating unit.
        # TODO(synk): bf16 exp on v6e/v7x (bf16 EUP) ~2x this stage; f32 kept for
        #   v5e portability and p_attn fidelity.
        s_exp = jnp.exp(scores - jnp.max(scores, axis=-1, keepdims=True))
        # exact divide on the returned p_attn path (rows sum to 1 exactly).
        p_attn = s_exp / jnp.sum(s_exp, axis=-1, keepdims=True)
        if return_attention:
            out_refs[1][0] = p_attn.astype(out_refs[1].dtype)

        # TODO(synk): dropout on p_weighted is treated as identity (eval mode / p=0).
        p_w = (LAMBDA_ATTENTION * p_attn + base[None]).astype(jnp.bfloat16)  # [H, TQ, S]
        v_h = v.astype(jnp.bfloat16)
        # one batched MXU contraction instead of H tiny per-head matmuls + concat.
        out = lax.dot_general(
            p_w, v_h, dimension_numbers=(((2,), (1,)), ((0,), (0,))),
            preferred_element_type=jnp.float32)                          # [H, TQ, D]
        out_ref[0] = out.astype(out_ref.dtype)

    return kernel


def _vmem_capacity_bytes():
    try:
        return int(pltpu.get_tpu_info().vmem_capacity_bytes)
    except Exception:
        return 64 * 1024 * 1024  # conservative floor (v7x per-TensorCore)


def mat_attention(query, key, value, mask, adj_matrix, distance_matrix,
                  *, return_attention=True):
    B, H, S, D = query.shape
    dt = query.dtype
    itemsize = jnp.dtype(dt).itemsize

    tq = _pick_query_tile(S)
    n_q = S // tq

    q_spec = pl.BlockSpec((1, H, tq, D), lambda b, qi: (b, 0, qi, 0))
    kv_spec = pl.BlockSpec((1, H, S, D), lambda b, qi: (b, 0, 0, 0))
    mask_spec = pl.BlockSpec((1, 1, S), lambda b, qi: (b, 0, 0))
    mat_spec = pl.BlockSpec((1, tq, S), lambda b, qi: (b, qi, 0))
    out_spec = pl.BlockSpec((1, H, tq, D), lambda b, qi: (b, 0, qi, 0))
    pattn_spec = pl.BlockSpec((1, H, tq, S), lambda b, qi: (b, 0, qi, 0))

    out_shapes = [jax.ShapeDtypeStruct((B, H, S, D), dt)]
    out_specs = [out_spec]
    if return_attention:
        out_shapes.append(jax.ShapeDtypeStruct((B, H, S, S), dt))
        out_specs.append(pattn_spec)

    # --- VMEM budget (per grid step) & per-generation scoped-VMEM limit ---
    in_bytes = (H * tq * D + 2 * H * S * D + S + 2 * tq * S) * itemsize
    out_bytes = (H * tq * D + (H * tq * S if return_attention else 0)) * itemsize
    interm = (4 * H * tq * S + 4 * tq * S) * 4            # f32 scores/p_attn/p_w/base/...
    interm += (2 * H * S * D + H * tq * S + H * tq * D) * 2   # bf16 MXU operand copies
    vmem_est = 2 * (in_bytes + out_bytes) + interm        # x2: double-buffered blocks
    cap = (_vmem_capacity_bytes() * 3) // 4
    vmem_limit = int(min(max(2 * vmem_est, 32 * 1024 * 1024), cap))

    compiler_params = pltpu.CompilerParams(
        dimension_semantics=("parallel", "parallel"),
        vmem_limit_bytes=vmem_limit)

    cost = pl.CostEstimate(
        flops=int(4 * B * H * S * S * D + 12 * B * H * S * S + 8 * B * S * S),
        transcendentals=int(B * (H + 1) * S * S),
        bytes_accessed=int(
            (B * H * S * D + 2 * n_q * B * H * S * D + B * S + 2 * B * S * S) * itemsize
            + B * H * S * D * itemsize
            + (B * H * S * S * itemsize if return_attention else 0)),
    )

    results = pl.pallas_call(
        _make_kernel(return_attention),
        out_shape=tuple(out_shapes),
        grid_spec=pltpu.PrefetchScalarGridSpec(
            num_scalar_prefetch=0,
            grid=(B, n_q),
            in_specs=[q_spec, kv_spec, kv_spec, mask_spec, mat_spec, mat_spec],
            out_specs=tuple(out_specs)),
        compiler_params=compiler_params,
        cost_estimate=cost,
    )(query, key, value, mask, adj_matrix, distance_matrix)

    if return_attention:
        out, p_attn = results
        return out, p_attn
    out = results[0] if isinstance(results, (tuple, list)) else results
    return out, None


def reference(query, key, value, mask, adj_matrix, distance_matrix):
    """Pure-JAX mirror of the PyTorch forward for validation."""
    d_k = query.shape[-1]
    scores = jnp.einsum('bhqd,bhkd->bhqk', query, key) / math.sqrt(d_k)
    scores = jnp.where(mask[:, None, :, :] == 0, -NEG_INF, scores)
    p_attn = jax.nn.softmax(scores, axis=-1)
    p_adj = (adj_matrix / (adj_matrix.sum(-1, keepdims=True) + EPS))[:, None]
    dm = jnp.where(mask == 0, jnp.inf, distance_matrix)  # mask [B,1,S] broadcasts
    p_dist = jax.nn.softmax(-dm, axis=-1)[:, None]
    p_w = (LAMBDA_ATTENTION * p_attn + LAMBDA_DISTANCE * p_dist
           + LAMBDA_ADJACENCY * p_adj)
    out = jnp.einsum('bhqk,bhkd->bhqd', p_w, value)
    return out, p_attn


if __name__ == "__main__":
    B, H, S, D = 2, 4, 8, 32
    key0 = jax.random.PRNGKey(0)
    kq, kk, kv, km, ka, kd = jax.random.split(key0, 6)

    query = jax.random.normal(kq, (B, H, S, D), dtype=jnp.float32)
    key_ = jax.random.normal(kk, (B, H, S, D), dtype=jnp.float32)
    value = jax.random.normal(kv, (B, H, S, D), dtype=jnp.float32)
    # mask [B,1,S] with at least one valid key per batch
    mask = (jax.random.uniform(km, (B, 1, S)) > 0.3).astype(jnp.float32)
    mask = mask.at[:, :, 0].set(1.0)
    # adjacency: binary-ish, nonnegative
    adj_matrix = (jax.random.uniform(ka, (B, S, S)) > 0.5).astype(jnp.float32)
    # distances: nonnegative
    distance_matrix = jax.random.uniform(kd, (B, S, S), dtype=jnp.float32) * 5.0

    out, p_attn = mat_attention(query, key_, value, mask, adj_matrix, distance_matrix)
    out = jax.block_until_ready(out)
    p_attn = jax.block_until_ready(p_attn)

    ref_out, ref_attn = reference(query, key_, value, mask, adj_matrix, distance_matrix)
    assert out.shape == (B, H, S, D) and p_attn.shape == (B, H, S, S)
    # tolerances cover bf16 MXU operands (f32 accumulation) and EUP approximate
    # reciprocals on the adjacency / distance normalizations.
    assert jnp.allclose(out, ref_out, atol=2e-2, rtol=2e-2)
    assert jnp.allclose(p_attn, ref_attn, atol=2e-2, rtol=2e-2)
    # returned p_attn uses an exact divide: rows sum to 1.
    assert jnp.allclose(p_attn.sum(-1), 1.0, atol=1e-3)
    assert bool(jnp.all(jnp.isfinite(out))) and bool(jnp.all(jnp.isfinite(p_attn)))

    print("KERNEL_OK")
</pallas_src>

<mosaic_0001>
module attributes {stable_mosaic.version = 11 : i64} {
  func.func @kernel(%arg0: i32, %arg1: i32, %arg2: memref<1x4x8x32xf32, #tpu.memory_space<vmem>>, %arg3: memref<1x4x8x32xf32, #tpu.memory_space<vmem>>, %arg4: memref<1x4x8x32xf32, #tpu.memory_space<vmem>>, %arg5: memref<1x1x8xf32, #tpu.memory_space<vmem>>, %arg6: memref<1x8x8xf32, #tpu.memory_space<vmem>>, %arg7: memref<1x8x8xf32, #tpu.memory_space<vmem>>, %arg8: memref<1x4x8x32xf32, #tpu.memory_space<vmem>>, %arg9: memref<1x4x8x8xf32, #tpu.memory_space<vmem>>) attributes {dimension_semantics = [#tpu.dimension_semantics<parallel>, #tpu.dimension_semantics<parallel>], iteration_bounds = array<i64: 2, 1>, scalar_prefetch = 0 : i64, scratch_operands = 0 : i64, tpu.core_type = #tpu.core_type<tc>, window_params = [{transform_indices = @transform_0, window_bounds = array<i64: 1, 4, 8, 32>}, {transform_indices = @transform_1, window_bounds = array<i64: 1, 4, 8, 32>}, {transform_indices = @transform_2, window_bounds = array<i64: 1, 4, 8, 32>}, {transform_indices = @transform_3, window_bounds = array<i64: 1, 1, 8>}, {transform_indices = @transform_4, window_bounds = array<i64: 1, 8, 8>}, {transform_indices = @transform_5, window_bounds = array<i64: 1, 8, 8>}, {transform_indices = @transform_6, window_bounds = array<i64: 1, 4, 8, 32>}, {transform_indices = @transform_7, window_bounds = array<i64: 1, 4, 8, 8>}]} {
    %c0 = arith.constant 0 : index
    %c0_0 = arith.constant 0 : index
    %c0_1 = arith.constant 0 : index
    %c0_2 = arith.constant 0 : index
    %0 = vector.load %arg2[%c0, %c0_0, %c0_1, %c0_2] : memref<1x4x8x32xf32, #tpu.memory_space<vmem>>, vector<1x4x8x32xf32>
    %1 = vector.shape_cast %0 : vector<1x4x8x32xf32> to vector<4x8x32xf32>
    %c0_3 = arith.constant 0 : index
    %c0_4 = arith.constant 0 : index
    %c0_5 = arith.constant 0 : index
    %c0_6 = arith.constant 0 : index
    %2 = vector.load %arg3[%c0_3, %c0_4, %c0_5, %c0_6] : memref<1x4x8x32xf32, #tpu.memory_space<vmem>>, vector<1x4x8x32xf32>
    %3 = vector.shape_cast %2 : vector<1x4x8x32xf32> to vector<4x8x32xf32>
    %c0_7 = arith.constant 0 : index
    %c0_8 = arith.constant 0 : index
    %c0_9 = arith.constant 0 : index
    %c0_10 = arith.constant 0 : index
    %4 = vector.load %arg4[%c0_7, %c0_8, %c0_9, %c0_10] : memref<1x4x8x32xf32, #tpu.memory_space<vmem>>, vector<1x4x8x32xf32>
    %5 = vector.shape_cast %4 : vector<1x4x8x32xf32> to vector<4x8x32xf32>
    %c0_11 = arith.constant 0 : index
    %c0_12 = arith.constant 0 : index
    %c0_13 = arith.constant 0 : index
    %6 = vector.load %arg5[%c0_11, %c0_12, %c0_13] : memref<1x1x8xf32, #tpu.memory_space<vmem>>, vector<1x1x8xf32>
    %7 = vector.shape_cast %6 : vector<1x1x8xf32> to vector<8xf32>
    %c0_14 = arith.constant 0 : index
    %c0_15 = arith.constant 0 : index
    %c0_16 = arith.constant 0 : index
    %8 = vector.load %arg6[%c0_14, %c0_15, %c0_16] : memref<1x8x8xf32, #tpu.memory_space<vmem>>, vector<1x8x8xf32>
    %9 = vector.shape_cast %8 : vector<1x8x8xf32> to vector<8x8xf32>
    %c0_17 = arith.constant 0 : index
    %c0_18 = arith.constant 0 : index
    %c0_19 = arith.constant 0 : index
    %10 = vector.load %arg7[%c0_17, %c0_18, %c0_19] : memref<1x8x8xf32, #tpu.memory_space<vmem>>, vector<1x8x8xf32>
    %11 = vector.shape_cast %10 : vector<1x8x8xf32> to vector<8x8xf32>
    %cst = arith.constant 0.000000e+00 : f32
    %12 = vector.broadcast %cst : f32 to vector<8xf32>
    %13 = arith.cmpf one, %7, %12 : vector<8xf32>
    %14 = vector.shape_cast %13 : vector<8xi1> to vector<1x8xi1>
    %cst_20 = arith.constant dense<0.000000e+00> : vector<8xf32>
    %15 = vector.multi_reduction <add>, %9, %cst_20 [1] : vector<8x8xf32> to vector<8xf32>
    %16 = vector.shape_cast %15 : vector<8xf32> to vector<8x1xf32>
    %cst_21 = arith.constant 9.99999997E-7 : f32
    %17 = vector.broadcast %cst_21 : f32 to vector<8x1xf32>
    %18 = arith.addf %16, %17 : vector<8x1xf32>
    %19 = tpu.reciprocal %18 {approx = true} : vector<8x1xf32> -> vector<8x1xf32>
    %20 = vector.broadcast %19 : vector<8x1xf32> to vector<8x8xf32>
    %21 = arith.mulf %9, %20 : vector<8x8xf32>
    %cst_22 = arith.constant 0.000000e+00 : f32
    %22 = vector.broadcast %cst_22 : f32 to vector<8x8xf32>
    %23 = arith.subf %22, %11 : vector<8x8xf32>
    %cst_23 = arith.constant -9.99999995E+11 : f32
    %24 = vector.shape_cast %14 : vector<1x8xi1> to vector<1x8xi1>
    %25 = vector.broadcast %24 : vector<1x8xi1> to vector<8x8xi1>
    %26 = vector.broadcast %cst_23 : f32 to vector<8x8xf32>
    %27 = arith.select %25, %23, %26 : vector<8x8xi1>, vector<8x8xf32>
    %cst_24 = arith.constant dense<0xFF800000> : vector<8xf32>
    %28 = vector.multi_reduction <maximumf>, %27, %cst_24 [1] : vector<8x8xf32> to vector<8xf32>
    %29 = vector.shape_cast %28 : vector<8xf32> to vector<8x1xf32>
    %30 = vector.broadcast %29 : vector<8x1xf32> to vector<8x8xf32>
    %31 = arith.subf %27, %30 : vector<8x8xf32>
    %32 = math.exp %31 : vector<8x8xf32>
    %cst_25 = arith.constant dense<0.000000e+00> : vector<8xf32>
    %33 = vector.multi_reduction <add>, %32, %cst_25 [1] : vector<8x8xf32> to vector<8xf32>
    %34 = vector.shape_cast %33 : vector<8xf32> to vector<8x1xf32>
    %35 = tpu.reciprocal %34 {approx = true} : vector<8x1xf32> -> vector<8x1xf32>
    %36 = vector.broadcast %35 : vector<8x1xf32> to vector<8x8xf32>
    %37 = arith.mulf %32, %36 : vector<8x8xf32>
    %cst_26 = arith.constant 3.300000e-01 : f32
    %38 = vector.broadcast %cst_26 : f32 to vector<8x8xf32>
    %39 = arith.mulf %38, %37 : vector<8x8xf32>
    %cst_27 = arith.constant 3.400000e-01 : f32
    %40 = vector.broadcast %cst_27 : f32 to vector<8x8xf32>
    %41 = arith.mulf %40, %21 : vector<8x8xf32>
    %42 = arith.addf %39, %41 : vector<8x8xf32>
    %cst_28 = arith.constant 0.176776692 : f32
    %43 = vector.broadcast %cst_28 : f32 to vector<4x8x32xf32>
    %44 = arith.mulf %1, %43 : vector<4x8x32xf32>
    %45 = arith.truncf %44 : vector<4x8x32xf32> to vector<4x8x32xbf16>
    %46 = arith.truncf %3 : vector<4x8x32xf32> to vector<4x8x32xbf16>
    %cst_29 = arith.constant dense<0.000000e+00> : vector<4x8x8xf32>
    %47 = tpu.matmul %45, %46, %cst_29 {dimension_numbers = #tpu.dot_dimension_numbers<[2], [2], [1], [1], [0, 0, 0, 1, 1, 1], [0], [0]>} : vector<4x8x32xbf16>, vector<4x8x32xbf16>, vector<4x8x8xf32> -> vector<4x8x8xf32>
    %48 = vector.shape_cast %14 : vector<1x8xi1> to vector<1x1x8xi1>
    %cst_30 = arith.constant -9.99999995E+11 : f32
    %49 = vector.shape_cast %48 : vector<1x1x8xi1> to vector<1x1x8xi1>
    %50 = vector.broadcast %49 : vector<1x1x8xi1> to vector<4x8x8xi1>
    %51 = vector.broadcast %cst_30 : f32 to vector<4x8x8xf32>
    %52 = arith.select %50, %47, %51 : vector<4x8x8xi1>, vector<4x8x8xf32>
    %cst_31 = arith.constant dense<0xFF800000> : vector<4x8xf32>
    %53 = vector.multi_reduction <maximumf>, %52, %cst_31 [2] : vector<4x8x8xf32> to vector<4x8xf32>
    %54 = vector.shape_cast %53 : vector<4x8xf32> to vector<4x8x1xf32>
    %55 = vector.broadcast %54 : vector<4x8x1xf32> to vector<4x8x8xf32>
    %56 = arith.subf %52, %55 : vector<4x8x8xf32>
    %57 = math.exp %56 : vector<4x8x8xf32>
    %cst_32 = arith.constant dense<0.000000e+00> : vector<4x8xf32>
    %58 = vector.multi_reduction <add>, %57, %cst_32 [2] : vector<4x8x8xf32> to vector<4x8xf32>
    %59 = vector.shape_cast %58 : vector<4x8xf32> to vector<4x8x1xf32>
    %60 = vector.broadcast %59 : vector<4x8x1xf32> to vector<4x8x8xf32>
    %61 = arith.divf %57, %60 : vector<4x8x8xf32>
    %c0_33 = arith.constant 0 : index
    %c0_34 = arith.constant 0 : index
    %c0_35 = arith.constant 0 : index
    %c0_36 = arith.constant 0 : index
    %62 = vector.load %arg9[%c0_33, %c0_34, %c0_35, %c0_36] : memref<1x4x8x8xf32, #tpu.memory_space<vmem>>, vector<1x4x8x8xf32>
    %63 = vector.shape_cast %62 : vector<1x4x8x8xf32> to vector<4x8x8xf32>
    %64 = vector.shape_cast %61 : vector<4x8x8xf32> to vector<1x4x8x8xf32>
    tpu.vector_store %arg9[%c0_33, %c0_34, %c0_35, %c0_36], %64 {strides = array<i32>} : memref<1x4x8x8xf32, #tpu.memory_space<vmem>>, vector<1x4x8x8xf32>,
    %cst_37 = arith.constant 3.300000e-01 : f32
    %65 = vector.broadcast %cst_37 : f32 to vector<4x8x8xf32>
    %66 = arith.mulf %65, %61 : vector<4x8x8xf32>
    %67 = vector.shape_cast %42 : vector<8x8xf32> to vector<1x8x8xf32>
    %68 = vector.broadcast %67 : vector<1x8x8xf32> to vector<4x8x8xf32>
    %69 = arith.addf %66, %68 : vector<4x8x8xf32>
    %70 = arith.truncf %69 : vector<4x8x8xf32> to vector<4x8x8xbf16>
    %71 = arith.truncf %5 : vector<4x8x32xf32> to vector<4x8x32xbf16>
    %cst_38 = arith.constant dense<0.000000e+00> : vector<4x8x32xf32>
    %72 = tpu.matmul %70, %71, %cst_38 {dimension_numbers = #tpu.dot_dimension_numbers<[2], [1], [1], [2], [0, 0, 0, 1, 1, 2], [0], [0]>} : vector<4x8x8xbf16>, vector<4x8x32xbf16>, vector<4x8x32xf32> -> vector<4x8x32xf32>
    %c0_39 = arith.constant 0 : index
    %c0_40 = arith.constant 0 : index
    %c0_41 = arith.constant 0 : index
    %c0_42 = arith.constant 0 : index
    %73 = vector.load %arg8[%c0_39, %c0_40, %c0_41, %c0_42] : memref<1x4x8x32xf32, #tpu.memory_space<vmem>>, vector<1x4x8x32xf32>
    %74 = vector.shape_cast %73 : vector<1x4x8x32xf32> to vector<4x8x32xf32>
    %75 = vector.shape_cast %72 : vector<4x8x32xf32> to vector<1x4x8x32xf32>
    tpu.vector_store %arg8[%c0_39, %c0_40, %c0_41, %c0_42], %75 {strides = array<i32>} : memref<1x4x8x32xf32, #tpu.memory_space<vmem>>, vector<1x4x8x32xf32>,
    return
  }
  func.func @transform_0(%arg0: i32, %arg1: i32) -> (i32, i32, i32, i32) {
    %c0_i32 = arith.constant 0 : i32
    %c0_i32_0 = arith.constant 0 : i32
    %c0_i32_1 = arith.constant 0 : i32
    return %arg0, %c0_i32, %arg1, %c0_i32_0 : i32, i32, i32, i32
  }
  func.func @transform_1(%arg0: i32, %arg1: i32) -> (i32, i32, i32, i32) {
    %c0_i32 = arith.constant 0 : i32
    %c0_i32_0 = arith.constant 0 : i32
    %c0_i32_1 = arith.constant 0 : i32
    %c0_i32_2 = arith.constant 0 : i32
    return %arg0, %c0_i32, %c0_i32_0, %c0_i32_1 : i32, i32, i32, i32
  }
  func.func @transform_2(%arg0: i32, %arg1: i32) -> (i32, i32, i32, i32) {
    %c0_i32 = arith.constant 0 : i32
    %c0_i32_0 = arith.constant 0 : i32
    %c0_i32_1 = arith.constant 0 : i32
    %c0_i32_2 = arith.constant 0 : i32
    return %arg0, %c0_i32, %c0_i32_0, %c0_i32_1 : i32, i32, i32, i32
  }
  func.func @transform_3(%arg0: i32, %arg1: i32) -> (i32, i32, i32) {
    %c0_i32 = arith.constant 0 : i32
    %c0_i32_0 = arith.constant 0 : i32
    %c0_i32_1 = arith.constant 0 : i32
    return %arg0, %c0_i32, %c0_i32_0 : i32, i32, i32
  }
  func.func @transform_4(%arg0: i32, %arg1: i32) -> (i32, i32, i32) {
    %c0_i32 = arith.constant 0 : i32
    %c0_i32_0 = arith.constant 0 : i32
    return %arg0, %arg1, %c0_i32 : i32, i32, i32
  }
  func.func @transform_5(%arg0: i32, %arg1: i32) -> (i32, i32, i32) {
    %c0_i32 = arith.constant 0 : i32
    %c0_i32_0 = arith.constant 0 : i32
    return %arg0, %arg1, %c0_i32 : i32, i32, i32
  }
  func.func @transform_6(%arg0: i32, %arg1: i32) -> (i32, i32, i32, i32) {
    %c0_i32 = arith.constant 0 : i32
    %c0_i32_0 = arith.constant 0 : i32
    %c0_i32_1 = arith.constant 0 : i32
    return %arg0, %c0_i32, %arg1, %c0_i32_0 : i32, i32, i32, i32
  }
  func.func @transform_7(%arg0: i32, %arg1: i32) -> (i32, i32, i32, i32) {
    %c0_i32 = arith.constant 0 : i32
    %c0_i32_0 = arith.constant 0 : i32
    %c0_i32_1 = arith.constant 0 : i32
    return %arg0, %c0_i32, %arg1, %c0_i32_0 : i32, i32, i32, i32
  }
}

</mosaic_0001>

<bundles_post_ra>
// kernel: tpu_custom_call.1
= control target key start
LH: loop header
LB: loop body
LE: loop exit
PB: predicated region body
PF: predicated region fallthrough
CT: control target
= control target key end

     0   :  { %s5180_s0 = inlined_call_operand.hbm [shape: f32[2,4,8,32], index: 0, kind: input, shape index: {}]   ;;  %s5181_s1 = inlined_call_operand.hbm [shape: f32[2,4,8,32], index: 1, kind: input, shape index: {}]   ;;  %s5182_s2 = inlined_call_operand.hbm [shape: f32[2,4,8,32], index: 2, kind: input, shape index: {}]   ;;  %s5183_s3 = inlined_call_operand.vmem [shape: f32[2,1,8], index: 3, kind: input, shape index: {}]   ;;  %s5184_s4 = inlined_call_operand.hbm [shape: f32[2,8,8], index: 4, kind: input, shape index: {}]   ;;  %s5185_s5 = inlined_call_operand.vmem [shape: f32[2,8,8], index: 5, kind: input, shape index: {}]   ;;  %s5186_s6 = inlined_call_operand.hbm [shape: f32[2,4,8,32], index: 6, kind: output, shape index: {0}]   ;;  %s5187_s7 = inlined_call_operand.hbm [shape: f32[2,4,8,8], index: 7, kind: output, shape index: {1}]  }
   0x1   :  { %5228 = sst [smem:[#allocation42_spill]] %s5180_s0 }
   0x2   :  { %5229 = sst [smem:[#allocation43_spill]] %s5181_s1 }
   0x3   :  { %5230 = sst [smem:[#allocation44_spill]] %s5186_s6 }
   0x4   :  { %5231 = sst [smem:[#allocation45_spill]] %s5187_s7 }
   0x5   :  { %13 = vsyncpa [#allocation3], 0 }
   0x6   :  { %15 = vsyncpa [#allocation3 + $0x1], 0 }
   0x7   :  { %16 = vsyncpa [#allocation6], 0 }
   0x8   :  { %18 = vsyncpa [#allocation6 + $0x1], 0 }
   0x9   :  { %19 = vsyncpa [#allocation9], 0 }
   0xa   :  { %21 = vsyncpa [#allocation9 + $0x1], 0 }
   0xb   :  { %22 = vsyncpa [#allocation4], 0 }
   0xc   :  { %24 = vsyncpa [#allocation4 + $0x1], 0 }
   0xd   :  { %25 = vsyncpa [#allocation12], 0 }
   0xe   :  { %27 = vsyncpa [#allocation12 + $0x1], 0  ;;  %s3873_s24 = smov 0   ;;  %s3875_s25 = smov 0  }
   0xf   :  { %s3877_s26 = smov 0   ;;  %s3879_s27 = smov 0  }
  0x10   :  { %s3881_s28 = smov 0   ;;  %s3883_s29 = smov 0  }
  0x11 LB: > { %5232 = sst [smem:[#allocation18_spill]] %s3798_s24  ;;  %s3904_s30 = sadd.s32 4294967295, %s3818_s29   ;;  %s3818_s29 = sphi %s3883_s29, %s33_s29   ;;  %s3814_s28 = sphi %s3881_s28, %s5327_s28   ;;  %s3810_s27 = sphi %s3879_s27, %s5326_s27   ;;  %s3806_s26 = sphi %s3877_s26, %s5322_s26   ;;  %s3802_s25 = sphi %s3875_s25, %s5325_s25   ;;  %s3798_s24 = sphi %s3873_s24, %s5324_s24  }
  0x12   : > { %5233 = sst [smem:[#allocation19_spill]] %s3806_s26  ;;  %s3232_s8 = sadd.s32 4294967294, %s3818_s29  }
  0x13   : > { %5234 = sst [smem:[#allocation20_spill]] %s3818_s29  ;;  %s45_s9 = sadd.s32 1, %s3814_s28 }
  0x14   : > { %s54_s10 = sadd.s32 1, %s3806_s26  ;;  %p47_p0 = scmp.ge.s32.totalorder %s45_s9, 2 }
  0x15   : > { %p61_p1 = scmp.ne.s32.totalorder %s3806_s26, %s3802_s25  ;;  %p62_p2 = scmp.eq.s32.totalorder %s3818_s29, 0 }
  0x16   : > { %p67_p3 = scmp.ne.s32.totalorder %s3802_s25, %s3798_s24  ;;  %s5329_s9 = smov (%p47_p0, %s45_s9), 0 }
  0x17   : > { %5235 = sst [smem:[#allocation21_spill]] %s5329_s9  ;;  %p3916_p4 = por %p62_p2, %p61_p1 }
  0x18   : > { %p68_p5 = scmp.eq.s32.totalorder %s3904_s30, 0  ;;  %s49_s12 = ssub.s32 %s3814_s28, %s5329_s9 }
  0x19   : > { %p227_p6 = scmp.eq.s32.totalorder %s3904_s30, 1  ;;  %p52_p7 = scmp.eq.s32.totalorder %s49_s12, 0 }
  0x1a   : > { %p3924_p8 = por %p68_p5, %p67_p3  ;;  %p233_p10 = scmp.eq.s32.totalorder %s3232_s8, 1 }
  0x1b   : > { %p3928_p9 = por %p227_p6, %p61_p1  ;;  %p3371_p13 = scmp.lt.s32.totalorder %s3818_s29, 2 }
  0x1c   : > { %s5237_s13 = scalar_select %p3924_p8, 1, 0 }
  0x1d   : > { %s5238_s14 = scalar_select %p3928_p9, 1, 0 }
  0x1e   : > { %s3933_s15 = scalar_select %p52_p7, %s3806_s26, %s54_s10  }
  0x1f   : > { %p3935_p11 = por %p233_p10, %p67_p3  ;;  %s3942_s17 = sand.u32 1, %s3806_s26  }
  0x20   : > { %5239 = sst [smem:[#allocation22_spill]] %s3933_s15  ;;  %s3945_s18 = sshll.u32 %s3942_s17, 5 }
  0x21   : > { %s5240_s16 = scalar_select %p3935_p11, 1, 0 }
  0x22   : > { %s3948_s19 = sshll.u32 %s3814_s28, 9  ;;  %p3952_p0 = pnand %p3371_p13, %p3916_p4 }
  0x23   : > { %5241 = sst [smem:[#allocation23_spill]] %s5240_s16  ;;  %s303_s21 = sand.u32 1, %s3818_s29  }
  0x24   : > { %s5242_s20 = scalar_select %p3952_p0, 1, 0 }
  0x25   : > { %s5243_s1 = sld [smem:[#allocation43_spill]]  ;;  %s307_s10 = scalar_lea.vmem [#allocation5], %s3945_s18 }
  0x26   : > { %s314_s12 = sshll.u32 %s307_s10, 4  ;;  %s3968_s11 = scalar_lea.sflag [#allocation6], %s303_s21  ;;  %s3965_s12 = int_to_ptr.vmem [resolvable:$true] %s314_s12 }
  0x27   : > { %p3974_p4 = pneg %p3952_p0 }
  0x2b   : > { %s3961_s8 = scalar_lea.hbm %s5243_s1, %s3948_s19  ;;  %s3581_s10 = scalar_lea.hbm %s5243_s1, 1024 }
  0x2c   : > { %s3576_s9 = scalar_lea.hbm %s3961_s8, 512  ;;  %p3582_p7 = scmp.lt.u32.totalorder %s3961_s8, %s5243_s1 }
  0x2d   : > { %p3577_p3 = scmp.ne.s32.totalorder %s3961_s8, %s3576_s9  ;;  %p3583_p10 = scmp.lt.u32.totalorder %s3581_s10, %s3576_s9 }
  0x2e   : > { %p3585_p12 = scmp.lt.u32.totalorder %s3576_s9, %s3961_s8 }
  0x2f   : > { %p3579_p5 = pnand %p3974_p4, %p3577_p3  ;;  %p3584_p13 = por %p3583_p10, %p3582_p7 }
  0x31   : > { %p3580_p6 = pneg %p3579_p5  ;;  %p3586_p1 = por %p3585_p12, %p3584_p13 }
  0x33   : > { %p3587_p2 = pnand %p3586_p1, %p3580_p6 }
  0x35   : > { %3590 = shalt.err (!%p3587_p2)
}
  0x36   : > { %s3591_s21 = scalar_lea.vmem %s3965_s12, 512  ;;  %s3820_s22 = smov [#allocation5]  }
  0x37   : > { %p3592_p3 = scmp.ne.s32.totalorder %s3965_s12, %s3591_s21  ;;  %s3596_s23 = sshll.u32 %s3820_s22, 4  ;;  %s3597_s23 = int_to_ptr.vmem [resolvable:$false] %s3596_s23 }
  0x38   : > { %s3598_s26 = scalar_lea.vmem %s3597_s23, 1024  ;;  %p3599_p9 = scmp.lt.s32.totalorder %s3965_s12, %s3597_s23 }
  0x39   : > { %p3594_p5 = pnand %p3592_p3, %p3974_p4  ;;  %p3600_p8 = scmp.lt.s32.totalorder %s3598_s26, %s3591_s21 }
  0x3b   : > { %p3595_p11 = pneg %p3594_p5  ;;  %p3601_p7 = por %p3600_p8, %p3599_p9 }
  0x3d   : > { %p3602_p10 = pnand %p3601_p7, %p3595_p11 }
  0x3f   : > { %3605 = shalt.err (!%p3602_p10)
}
  0x40   : > { %s5193_s9 = smov 128   ;;  %s5195_s16 = smov 8  }
  0x41   : > { %3357 = dma.hbm_to_vmem [thread:$0]  (!%p3952_p0), %s3961_s8, 512, %s3965_s12, %s3968_s11, %s5193_s9, %s5193_s9, %s5195_s16  }
  0x42   : > { %p5245_p8 = scmp.lt.s32.totalorder %s3818_s29, 3  ;;  %p5246_p9 = scmp.ge.s32.totalorder %s3818_s29, 1 }
  0x43   : > { %s5248_s0 = sld [smem:[#allocation42_spill]]  ;;  %s285_s26 = scalar_lea.vmem [#allocation2], %s3945_s18 }
  0x44   : > { %p4005_p11 = pnand %p5246_p9, %p5245_p8  ;;  %s293_s1 = sshll.u32 %s285_s26, 4  ;;  %s4016_s1 = int_to_ptr.vmem [resolvable:$true] %s293_s1 }
  0x45   : > { %s4022_s9 = scalar_lea.hbm %s5182_s2, %s3948_s19  ;;  %s282_s16 = scalar_lea.sflag [#allocation3], %s3942_s17 }
  0x46   : > { %s5247_s10 = scalar_select %p4005_p11, 1, 0 }
  0x49   : > { %s4013_s23 = scalar_lea.hbm %s5248_s0, %s3948_s19  ;;  %s3611_s24 = scalar_lea.hbm %s5248_s0, 1024 }
  0x4a   : > { %s3606_s29 = scalar_lea.hbm %s4013_s23, 512  ;;  %p3612_p6 = scmp.lt.u32.totalorder %s4013_s23, %s5248_s0 }
  0x4b   : > { %p3607_p12 = scmp.ne.s32.totalorder %s4013_s23, %s3606_s29  ;;  %p3613_p13 = scmp.lt.u32.totalorder %s3611_s24, %s3606_s29 }
  0x4c   : > { %p3615_p5 = scmp.lt.u32.totalorder %s3606_s29, %s4013_s23 }
  0x4d   : > { %p3609_p1 = pnand %p3607_p12, %p3974_p4  ;;  %p3614_p3 = por %p3613_p13, %p3612_p6 }
  0x4f   : > { %p3610_p2 = pneg %p3609_p1  ;;  %p3616_p7 = por %p3615_p5, %p3614_p3 }
  0x51   : > { %p3617_p10 = pnand %p3616_p7, %p3610_p2 }
  0x53   : > { %3620 = shalt.err (!%p3617_p10)
}
  0x54   : > { %s3621_s19 = scalar_lea.vmem %s4016_s1, 512  ;;  %s3823_s26 = smov [#allocation2]  }
  0x55   : > { %p3622_p8 = scmp.ne.s32.totalorder %s4016_s1, %s3621_s19  ;;  %s3626_s8 = sshll.u32 %s3823_s26, 4  ;;  %s3627_s8 = int_to_ptr.vmem [resolvable:$false] %s3626_s8 }
  0x56   : > { %s3628_s6 = scalar_lea.vmem %s3627_s8, 1024  ;;  %p3629_p1 = scmp.lt.s32.totalorder %s4016_s1, %s3627_s8 }
  0x57   : > { %p3624_p9 = pnand %p3622_p8, %p3974_p4  ;;  %p3630_p11 = scmp.lt.s32.totalorder %s3628_s6, %s3621_s19 }
  0x59   : > { %p3625_p12 = pneg %p3624_p9  ;;  %p3631_p6 = por %p3630_p11, %p3629_p1 }
  0x5b   : > { %p3632_p13 = pnand %p3631_p6, %p3625_p12 }
  0x5d   : > { %3635 = shalt.err (!%p3632_p13)
}
  0x5e   : > { %s5249_s7 = smov 8   ;;  %s5250_s24 = smov 128  }
  0x5f   : > { %3354 = dma.hbm_to_vmem [thread:$0]  (!%p3952_p0), %s4013_s23, 512, %s4016_s1, %s282_s16, %s5250_s24, %s5250_s24, %s5249_s7  }
  0x60   : > { %s328_s29 = scalar_lea.vmem [#allocation7], %s3945_s18  ;;  %s3244_s21 = sshll.u32 %s3942_s17, 3 }
  0x61   : > { %s335_s12 = sshll.u32 %s328_s29, 4  ;;  %s3636_s22 = scalar_lea.hbm %s4022_s9, 512  ;;  %s4052_s12 = int_to_ptr.vmem [resolvable:$true] %s335_s12 }
  0x62   : > { %p3637_p11 = scmp.ne.s32.totalorder %s4022_s9, %s3636_s22  ;;  %s3641_s8 = scalar_lea.hbm %s5182_s2, 1024 }
  0x63   : > { %p3642_p5 = scmp.lt.u32.totalorder %s4022_s9, %s5182_s2  ;;  %p3643_p7 = scmp.lt.u32.totalorder %s3641_s8, %s3636_s22 }
  0x64   : > { %p3639_p2 = pnand %p3637_p11, %p3974_p4  ;;  %p3645_p8 = scmp.lt.u32.totalorder %s3636_s22, %s4022_s9 }
  0x65   : > { %p3644_p10 = por %p3643_p7, %p3642_p5 }
  0x66   : > { %p3640_p3 = pneg %p3639_p2 }
  0x67   : > { %p3646_p9 = por %p3645_p8, %p3644_p10 }
  0x69   : > { %p3647_p12 = pnand %p3646_p9, %p3640_p3 }
  0x6b   : > { %3650 = shalt.err (!%p3647_p12)
}
  0x6c   : > { %s3651_s1 = scalar_lea.vmem %s4052_s12, 512  ;;  %s3824_s18 = smov [#allocation7]  }
  0x6d   : > { %p3652_p1 = scmp.ne.s32.totalorder %s4052_s12, %s3651_s1  ;;  %s3656_s16 = sshll.u32 %s3824_s18, 4  ;;  %s3657_s16 = int_to_ptr.vmem [resolvable:$false] %s3656_s16 }
  0x6e   : > { %s3658_s0 = scalar_lea.vmem %s3657_s16, 1024  ;;  %p3659_p11 = scmp.lt.s32.totalorder %s4052_s12, %s3657_s16 }
  0x6f   : > { %p3654_p6 = pnand %p3652_p1, %p3974_p4  ;;  %p3660_p2 = scmp.lt.s32.totalorder %s3658_s0, %s3651_s1 }
  0x71   : > { %p3655_p13 = pneg %p3654_p6  ;;  %p3661_p5 = por %p3660_p2, %p3659_p11 }
  0x73   : > { %p3662_p7 = pnand %p3661_p5, %p3655_p13 }
  0x75   : > { %3665 = shalt.err (!%p3662_p7)
}
  0x76   : > { %3360 = dma.hbm_to_vmem [thread:$0]  (!%p3952_p0), %s4022_s9, 512, %s4052_s12, %s3968_s11, %s5250_s24, %s5250_s24, %s5249_s7  }
  0x77   : > { %s3245_s23 = sshll.u32 %s3814_s28, 7  ;;  %s355_s26 = scalar_lea.vmem [#allocation8], %s3244_s21 }
  0x78   : > { %s4084_s19 = scalar_lea.hbm %s5184_s4, %s3245_s23  ;;  %s363_s8 = sshll.u32 %s355_s26, 4  ;;  %s364_s8 = int_to_ptr.vmem [resolvable:$true] %s363_s8 }
  0x79   : > { %s352_s6 = scalar_lea.sflag [#allocation9], %s3942_s17  ;;  %s3666_s1 = scalar_lea.hbm %s4084_s19, 128 }
  0x7a   : > { %p3667_p3 = scmp.ne.s32.totalorder %s4084_s19, %s3666_s1  ;;  %s3671_s7 = scalar_lea.hbm %s5184_s4, 256 }
  0x7b   : > { %p3672_p9 = scmp.lt.u32.totalorder %s4084_s19, %s5184_s4  ;;  %p3673_p12 = scmp.lt.u32.totalorder %s3671_s7, %s3666_s1 }
  0x7c   : > { %p3669_p10 = pnand %p3667_p3, %p3974_p4  ;;  %p3675_p6 = scmp.lt.u32.totalorder %s3666_s1, %s4084_s19 }
  0x7d   : > { %p3674_p1 = por %p3673_p12, %p3672_p9 }
  0x7e   : > { %p3670_p8 = pneg %p3669_p10 }
  0x7f   : > { %p3676_p13 = por %p3675_p6, %p3674_p1 }
  0x81   : > { %p3677_p11 = pnand %p3676_p13, %p3670_p8 }
  0x83   : > { %3680 = shalt.err (!%p3677_p11)
}
  0x84   : > { %s3681_s17 = scalar_lea.vmem %s364_s8, 128  ;;  %s3825_s21 = smov [#allocation8]  }
  0x85   : > { %p3682_p2 = scmp.ne.s32.totalorder %s364_s8, %s3681_s17  ;;  %s3686_s18 = sshll.u32 %s3825_s21, 4  ;;  %s3687_s18 = int_to_ptr.vmem [resolvable:$false] %s3686_s18 }
  0x86   : > { %s3688_s16 = scalar_lea.vmem %s3687_s18, 256  ;;  %p3689_p3 = scmp.lt.s32.totalorder %s364_s8, %s3687_s18 }
  0x87   : > { %p3684_p5 = pnand %p3682_p2, %p3974_p4  ;;  %p3690_p10 = scmp.lt.s32.totalorder %s3688_s16, %s3681_s17 }
  0x89   : > { %p3685_p7 = pneg %p3684_p5  ;;  %p3691_p0 = por %p3690_p10, %p3689_p3 }
  0x8b   : > { %p3692_p9 = pnand %p3691_p0, %p3685_p7 }
  0x8d   : > { %3695 = shalt.err (!%p3692_p9)
}
  0x8e   : > { %p5251_p12 = scmp.ne.s32.totalorder %s5242_s20, 0  ;;  %p5252_p8 = scmp.ne.s32.totalorder %s5247_s10, 0 }
  0x90   : > { %3363 = dma.hbm_to_vmem [thread:$0]  (!%p5251_p12), %s4084_s19, 128, %s364_s8, %s352_s6  }
  0x91   : > { %382 = sbr.rel (%p5252_p8) target bundleno = 1065 (0x429), region = 44 }
  0x98   : > { %s4109_s15 = sand.u32 1, %s3802_s25   ;;  %p5253_p0 = scmp.ne.s32.totalorder %s5237_s13, 0 }
  0x99   : > { %s4112_s0 = sshll.u32 %s4109_s15, 5  ;;  %s385_s23 = scalar_lea.sflag [#allocation3], %s4109_s15 }
  0x9a   : > { %s4116_s29 = scalar_lea.vmem [#allocation2], %s4112_s0 }
  0x9b   : > { %3777 = dma.done.wait (%p5253_p0), %s385_s23, 512  }
  0x9c   : > { %3779 = vsyncadd (%p5253_p0), %s385_s23, 4294966784  ;;  %s393_s20 = sand.u32 1, %s3904_s30   ;;  %s4124_s22 = scalar_lea.vmem [#allocation5], %s4112_s0 }
  0x9d   : > { %s394_s10 = scalar_lea.sflag [#allocation6], %s393_s20 }
  0x9e   : > { %3781 = dma.done.wait (%p5253_p0), %s394_s10, 1024  }
  0x9f   : > { %3783 = vsyncadd (%p5253_p0), %s394_s10, 4294966272  ;;  %s3250_s19 = sshll.u32 %s4109_s15, 3  ;;  %s4132_s26 = scalar_lea.vmem [#allocation7], %s4112_s0 }
  0xa0   : > { %s412_s8 = scalar_lea.sflag [#allocation9], %s4109_s15  ;;  %s4135_s6 = scalar_lea.vmem [#allocation8], %s3250_s19 }
  0xa1   : > { %3785 = dma.done.wait (%p5253_p0), %s412_s8, 128  }
  0xa2   : > { %3787 = vsyncadd (%p5253_p0), %s412_s8, 4294967168  ;;  %p476_p4 = scmp.lt.s32.totalorder %s3810_s27, 1  ;;  %v5203_v0 = vmov 0.0   ;;  %vm3827_vm0 = vmmov 0   ;;  %v3828_v1 = vmov 1966171168   ;;  %v518_v3 = vlaneseq }
  0xa3   : > { %3291 = vmatprep.subr.bf16.mxu0 %v5203_v0  ;;  %3297 = vmatprep.subr.bf16.mxu1 %v5203_v0  ;;  %v516_v2 = vunpack.c.l.s4 %v3828_v1  ;;  %v491_v6 = vld [vmem:[%s4124_s22] sm:$0xff]  ;;  %vm903_vm1 = vcmask 261120   ;;  %v492_v7 = vld [vmem:[%s4124_s22 + $0x8] sm:$0xff]  ;;  %v493_v12 = vld [vmem:[%s4124_s22 + $0x10] sm:$0xff]  ;;  %vm503_vm3 = vcmask 64512   ;;  %vm2705_vm4 = vcmask 1043456  }
  0xa4   : > { %3293 = vmatprep.mubr.msk.bf16.mxu0 %vm3827_vm0, %v5203_v0  ;;  %3299 = vmatprep.mubr.msk.bf16.mxu1 %vm3827_vm0, %v5203_v0  ;;  %s4149_s30 = scalar_select %p476_p4, %s3810_s27, 1  ;;  %v4152_v5 = vshrl.u32 %v518_v3, 7  ;;  %v487_v8 = vld [vmem:[%s4116_s29] sm:$0xff]  ;;  %v899_v9 = vpack.c.bf16 %v491_v6, %v491_v6  ;;  %v900_v10 = vpack.c.bf16 %v492_v7, %v492_v7  ;;  %v488_v11 = vld [vmem:[%s4116_s29 + $0x8] sm:$0xff]  ;;  %v494_v14 = vld [vmem:[%s4124_s22 + $0x18] sm:$0xff]  ;;  %v901_v20 = vpack.c.bf16 %v493_v12, %v493_v12 }
  0xa5   : > { %v517_v4 = vunpack.c.0.s8 %v516_v2  ;;  %v891_v13 = vmul.f32 0.17677669, %v487_v8  ;;  %v892_v17 = vmul.f32 0.17677669, %v488_v11  ;;  %v902_v21 = vpack.c.bf16 %v494_v14, %v494_v14  ;;  %v489_v22 = vld [vmem:[%s4116_s29 + $0x10] sm:$0xff]  ;;  %v490_v27 = vld [vmem:[%s4116_s29 + $0x18] sm:$0xff] }
  0xa6   : > { %s3253_s13 = sshll.u32 %s4149_s30, 3  ;;  %s478_s12 = scalar_lea.vmem %s5183_s3, %s4149_s30  ;;  %v908_v15 = vsel %vm903_vm1, %v899_v9, 0  ;;  %v954_v16 = vsel %vm903_vm1, %v900_v10, 0  ;;  %v1000_v30 = vsel %vm903_vm1, %v901_v20, 0  ;;  %v893_v31 = vmul.f32 0.17677669, %v489_v22 }
  0xa7   : > { %s485_s9 = scalar_lea.vmem %s5185_s5, %s3253_s13  ;;  %v4170_v19 = vsub.s32 %v517_v4, %v4152_v5  ;;  %3292 = vmatpush3.bf16.xpose.msra.mxu0 %v908_v15  ;;  %3298 = vmatpush3.bf16.xpose.msra.mxu1 %v954_v16  ;;  %v4175_v23 = vld [vmem:[%s478_s12] sm:$0x1]  ;;  %v895_v25 = vpack.c.bf16 %v891_v13, %v891_v13  ;;  %v896_v26 = vpack.c.bf16 %v892_v17, %v892_v17  ;;  %v1046_v32 = vsel %vm903_vm1, %v902_v21, 0  ;;  %s4872_s17 = scalar_lea.vmem [#allocation11], %s4112_s0 }
  0xa8   : > { %v501_v18 = vld [vmem:[%s485_s9] sm:$0xff]  ;;  %3303 = vmatprep.subr.bf16.mxu0 %v5203_v0  ;;  %3309 = vmatprep.subr.bf16.mxu1 %v5203_v0  ;;  %vm502_vm2 = vcmp.ne.f32.partialorder %v4175_v23, 0.0  ;;  %v894_v36 = vmul.f32 0.17677669, %v490_v27  ;;  %v897_v41 = vpack.c.bf16 %v893_v31, %v893_v31  ;;  %v4225_v7 = vsub.s32 0, %v4152_v5  ;;  %s3273_s21 = sshll.u32 %s3810_s27, 9 }
  0xa9   : > { %v510_v24 = vsub.f32 0.0, %v501_v18  ;;  %v4228_v8 = vsub.s32 1, %v4152_v5  ;;  %v4231_v10 = vsub.s32 2, %v4152_v5  ;;  %v4234_v11 = vsub.s32 3, %v4152_v5  ;;  %s5313_s23 = sld [smem:[#allocation45_spill]]  ;;  %s3021_s20 = sshll.u32 %s4872_s17, 4  ;;  %s5087_s20 = int_to_ptr.vmem [resolvable:$true] %s3021_s20 }
  0xaa   : > { %v898_v47 = vpack.c.bf16 %v894_v36, %v894_v36  ;;  %v4239_v14 = vsub.s32 4, %v4152_v5  ;;  %v4243_v16 = vsub.s32 5, %v4152_v5  ;;  %v4247_v18 = vsub.s32 6, %v4152_v5  ;;  %s2990_s10 = scalar_lea.sflag [#allocation12], %s4109_s15  ;;  %s3696_s22 = scalar_lea.vmem %s5087_s20, 512 }
  0xab   : > { %v514_v28 = vcombine.high %v510_v24, %v510_v24  ;;  %v521_v29 = vrot.slane %v510_v24, %v4170_v19  ;;  %v4250_v21 = vsub.s32 7, %v4152_v5  ;;  %vm2681_vm5 = vcmask 1041409   ;;  %p3697_p1 = scmp.ne.s32.totalorder %s5087_s20, %s3696_s22  ;;  %p5314_p6 = scmp.ne.s32.totalorder %s5238_s14, 0 }
  0xac   : > { %vm2684_vm6 = vcmask 1042434   ;;  %vm2687_vm7 = vcmask 1043459   ;;  %vm2690_vm8 = vcmask 1044484   ;;  %vm2693_vm9 = vcmask 1045509   ;;  %s3829_s19 = smov [#allocation11]  }
  0xad   : > { %v528_v33 = vrot.slane %v514_v28, %v4170_v19  ;;  %v529_v34 = vcombine.high %v521_v29, %v521_v29  ;;  %v537_v35 = vrot.slane %v521_v29, %v4170_v19  ;;  %vm2696_vm10 = vcmask 1046534   ;;  %p3698_p13 = pnand %p3697_p1, %p5314_p6 }
  0xae   : > { %3294 = vmatmul.mubr.msk.bf16.vlgmr.msra.gmra.mrb[0].mxu0 %vm903_vm1, %v895_v25  ;;  %3300 = vmatmul.mubr.msk.bf16.vlgmr.msra.gmra.mrb[0].mxu1 %vm903_vm1, %v896_v26  ;;  %vm2699_vm11 = vcmask 1047559  }
  0xaf   : > { %v530_v37 = vcombine.high %v528_v33, %v528_v33  ;;  %v544_v38 = vrot.slane %v528_v33, %v4170_v19  ;;  %v551_v39 = vrot.slane %v529_v34, %v4170_v19  ;;  %v571_v40 = vsel %vm502_vm2, %v537_v35, -1e+12  ;;  %3304 = vmatpush3.bf16.xpose.msra.mxu0 %v1000_v30  ;;  %3310 = vmatpush3.bf16.xpose.msra.mxu1 %v1046_v32  ;;  %s5084_s29 = scalar_lea.hbm %s5313_s23, %s3273_s21  ;;  %p3699_p11 = pneg %p3698_p13 }
  0xb0   : > { %v559_v42 = vcombine.high %v537_v35, %v537_v35  ;;  %3305 = vmatprep.mubr.msk.bf16.mxu0 %vm3827_vm0, %v5203_v0  ;;  %3311 = vmatprep.mubr.msk.bf16.mxu1 %vm3827_vm0, %v5203_v0 }
  0xb1   : > { %v558_v43 = vrot.slane %v530_v37, %v4170_v19  ;;  %v560_v44 = vcombine.high %v544_v38, %v544_v38  ;;  %v561_v45 = vcombine.high %v551_v39, %v551_v39  ;;  %v572_v46 = vsel %vm502_vm2, %v551_v39, -1e+12  ;;  %3315 = vmatprep.subr.bf16.mxu0 %v5203_v0  ;;  %3321 = vmatprep.subr.bf16.mxu1 %v5203_v0 }
  0xb2   : > { %v573_v48 = vsel %vm502_vm2, %v559_v42, -1e+12  ;;  %v575_v49 = vsel %vm502_vm2, %v544_v38, -1e+12  ;;  %v587_v50 = vcombine.low %v571_v40, %v572_v46 }
  0xb3   : > { %v562_v51 = vcombine.high %v558_v43, %v558_v43  ;;  %v574_v52 = vsel %vm502_vm2, %v561_v45, -1e+12  ;;  %v576_v53 = vsel %vm502_vm2, %v558_v43, -1e+12  ;;  %v577_v54 = vsel %vm502_vm2, %v560_v44, -1e+12 }
  0xb4   : > { %v588_v55 = vcombine.low %v573_v48, %v574_v52  ;;  %v589_v56 = vcombine.low %v575_v49, %v576_v53  ;;  %v597_v57 = vrot.slane %v587_v50, %v4170_v19 }
  0xb5   : > { %v578_v58 = vsel %vm502_vm2, %v562_v51, -1e+12 }
  0xb6   : > { %v590_v59 = vcombine.low %v577_v54, %v578_v58  ;;  %v604_v60 = vrot.slane %v588_v55, %v4170_v19  ;;  %v611_v61 = vrot.slane %v589_v56, %v4170_v19  ;;  %3306 = vmatmul.mubr.msk.bf16.vlgmr.msra.gmra.mrb[4].mxu0 %vm903_vm1, %v897_v41  ;;  %3312 = vmatmul.mubr.msk.bf16.vlgmr.msra.gmra.mrb[4].mxu1 %vm903_vm1, %v898_v47 }
  0xb7   : > { %3317 = vmatprep.mubr.msk.bf16.mxu0 %vm3827_vm0, %v5203_v0  ;;  %3323 = vmatprep.mubr.msk.bf16.mxu1 %vm3827_vm0, %v5203_v0 }
  0xb8   : > { %v618_v62 = vrot.slane %v590_v59, %v4170_v19  ;;  %v619_v63 = vcombine.low %v597_v57, %v604_v60 }
  0xba   : > { %v620_v1 = vcombine.low %v611_v61, %v618_v62  ;;  %v627_v2 = vrot.slane %v619_v63, %v4170_v19 }
  0xbc   : > { %v634_v3 = vrot.slane %v620_v1, %v4170_v19 }
  0xbe   : > { %v635_v4 = vcombine.low %v627_v2, %v634_v3 }
  0xc0   : > { %v637_v6 = vsel %vm503_vm3, %v635_v4, -inf }
  0xc1   : > { %638 = vmax.xlane.f32.xlu0 %v637_v6 }
 0x14e   : > { %v639_v9 = vpop.xlane.xlu0 %638 }
 0x14f   : > { %v644_v12 = vrot.slane %v639_v9, %v4225_v7  ;;  %v648_v13 = vrot.slane %v639_v9, %v4228_v8  ;;  %v652_v15 = vrot.slane %v639_v9, %v4231_v10  ;;  %v656_v17 = vrot.slane %v639_v9, %v4234_v11 }
 0x150   : > { %v660_v24 = vrot.slane %v639_v9, %v4239_v14  ;;  %v664_v26 = vrot.slane %v639_v9, %v4243_v16  ;;  %v668_v28 = vrot.slane %v639_v9, %v4247_v18  ;;  %v672_v30 = vrot.slane %v639_v9, %v4250_v21 }
 0x151   : > { %v681_v20 = vsub.f32 %v571_v40, %v644_v12  ;;  %v682_v22 = vsub.f32 %v572_v46, %v648_v13  ;;  %v683_v25 = vsub.f32 %v573_v48, %v652_v15  ;;  %v684_v27 = vsub.f32 %v574_v52, %v656_v17 }
 0x152   : > { %v685_v32 = vsub.f32 %v575_v49, %v660_v24  ;;  %v686_v34 = vsub.f32 %v576_v53, %v664_v26  ;;  %v687_v36 = vsub.f32 %v577_v54, %v668_v28  ;;  %v688_v5 = vsub.f32 %v578_v58, %v672_v30 }
 0x153   : > { %v689_v29 = vmul.f32 1.442695, %v681_v20  ;;  %v691_v31 = vmul.f32 1.442695, %v682_v22  ;;  %v693_v33 = vmul.f32 1.442695, %v683_v25 }
 0x154   : > { %v695_v35 = vmul.f32 1.442695, %v684_v27  ;;  %v697_v37 = vmul.f32 1.442695, %v685_v32  ;;  %v699_v38 = vmul.f32 1.442695, %v686_v34 }
 0x155   : > { %3428 = vpow2.f32 %v689_v29  ;;  %v701_v39 = vmul.f32 1.442695, %v687_v36  ;;  %v703_v40 = vmul.f32 1.442695, %v688_v5 }
 0x156   : > { %3430 = vpow2.f32 %v691_v31 }
 0x157   : > { %3432 = vpow2.f32 %v693_v33 }
 0x158   : > { %3434 = vpow2.f32 %v695_v35 }
 0x159   : > { %3436 = vpow2.f32 %v697_v37 }
 0x15a   : > { %3438 = vpow2.f32 %v699_v38 }
 0x15b   : > { %3440 = vpow2.f32 %v701_v39 }
 0x15c   : > { %3442 = vpow2.f32 %v703_v40 }
 0x15f   : > { %v4256_v41 = vpop.eup %3428 }
 0x160   : > { %5254 = vst [vmem:[#allocation24_spill] sm:$0xff] %v4256_v41  ;;  %v4258_v42 = vpop.eup %3430 }
 0x161   : > { %5255 = vst [vmem:[#allocation25_spill] sm:$0xff] %v4258_v42  ;;  %v4260_v43 = vpop.eup %3432  ;;  %v713_v46 = vcombine.low %v4256_v41, %v4258_v42 }
 0x162   : > { %5256 = vst [vmem:[#allocation26_spill] sm:$0xff] %v4260_v43  ;;  %v4262_v44 = vpop.eup %3434 }
 0x163   : > { %5257 = vst [vmem:[#allocation27_spill] sm:$0xff] %v4262_v44  ;;  %v4264_v45 = vpop.eup %3436  ;;  %v714_v47 = vcombine.low %v4260_v43, %v4262_v44  ;;  %v4279_v54 = vrot.slane %v713_v46, %v4170_v19 }
 0x164   : > { %5258 = vst [vmem:[#allocation28_spill] sm:$0xff] %v4264_v45  ;;  %v4270_v48 = vpop.eup %3438 }
 0x165   : > { %5259 = vst [vmem:[#allocation29_spill] sm:$0xff] %v4270_v48  ;;  %v4272_v49 = vpop.eup %3440  ;;  %v715_v53 = vcombine.low %v4264_v45, %v4270_v48  ;;  %v4282_v55 = vrot.slane %v714_v47, %v4170_v19 }
 0x166   : > { %5260 = vst [vmem:[#allocation30_spill] sm:$0xff] %v4272_v49  ;;  %v4274_v50 = vpop.eup %3442 }
 0x167   : > { %5261 = vst [vmem:[#allocation31_spill] sm:$0xff] %v4274_v50  ;;  %v716_v1 = vcombine.low %v4272_v49, %v4274_v50  ;;  %v4293_v17 = vrot.slane %v715_v53, %v4170_v19 }
 0x169   : > { %v4322_v39 = vrot.slane %v716_v1, %v4170_v19 }
 0x181   : > { %v944_v51 = vpop.f32.mrb[0].mxu0  ;;  %v990_v52 = vpop.f32.mrb[0].mxu1 }
 0x182   : > { %v1092_v56 = vcombine.high %v944_v51, %v944_v51  ;;  %v1099_v57 = vrot.slane %v944_v51, %v4170_v19  ;;  %v1141_v58 = vcombine.high %v990_v52, %v990_v52  ;;  %v1148_v59 = vrot.slane %v990_v52, %v4170_v19  ;;  %v3295_v60 = vpop.f32.mrb[1].mxu0  ;;  %v3301_v61 = vpop.f32.mrb[1].mxu1 }
 0x183   : > { %v947_v62 = vpop.f32.mrb[2].mxu0  ;;  %v993_v63 = vpop.f32.mrb[2].mxu1 }
 0x184   : > { %v1106_v2 = vrot.slane %v1092_v56, %v4170_v19  ;;  %v1107_v3 = vcombine.high %v1099_v57, %v1099_v57  ;;  %v1115_v4 = vrot.slane %v1099_v57, %v4170_v19  ;;  %v1155_v6 = vrot.slane %v1141_v58, %v4170_v19  ;;  %v3296_v9 = vpop.f32.mrb[3].mxu0  ;;  %v3302_v12 = vpop.f32.mrb[3].mxu1 }
 0x185   : > { %v1156_v13 = vcombine.high %v1148_v59, %v1148_v59  ;;  %v1164_v15 = vrot.slane %v1148_v59, %v4170_v19 }
 0x186   : > { %v1108_v22 = vcombine.high %v1106_v2, %v1106_v2  ;;  %v1122_v24 = vrot.slane %v1106_v2, %v4170_v19  ;;  %v1129_v25 = vrot.slane %v1107_v3, %v4170_v19  ;;  %v1137_v26 = vcombine.high %v1115_v4, %v1115_v4 }
 0x187   : > { %v4301_v27 = vsel %vm502_vm2, %v1115_v4, -1e+12  ;;  %v1157_v28 = vcombine.high %v1155_v6, %v1155_v6  ;;  %v1171_v29 = vrot.slane %v1155_v6, %v4170_v19  ;;  %v1178_v30 = vrot.slane %v1156_v13, %v4170_v19 }
 0x188   : > { %v4306_v31 = vrot.slane %v1108_v22, %v4170_v19  ;;  %v1138_v32 = vcombine.high %v1122_v24, %v1122_v24  ;;  %v1139_v33 = vcombine.high %v1129_v25, %v1129_v25  ;;  %v4310_v34 = vsel %vm502_vm2, %v1129_v25, -1e+12 }
 0x189   : > { %v4314_v35 = vsel %vm502_vm2, %v1137_v26, -1e+12  ;;  %v4318_v36 = vsel %vm502_vm2, %v1122_v24, -1e+12  ;;  %v1185_v5 = vrot.slane %v1157_v28, %v4170_v19  ;;  %v1036_v37 = vpop.f32.mrb[4].mxu0  ;;  %v1082_v38 = vpop.f32.mrb[4].mxu1  ;;  %v1186_v56 = vcombine.high %v1164_v15, %v1164_v15 }
 0x18a   : > { %v4328_v46 = vsel %vm502_vm2, %v1139_v33, -1e+12  ;;  %v4333_v47 = vsel %vm502_vm2, %v4306_v31, -1e+12  ;;  %v4339_v52 = vsel %vm502_vm2, %v1138_v32, -1e+12  ;;  %v1187_v57 = vcombine.high %v1171_v29, %v1171_v29 }
 0x18b   : > { %v3307_v58 = vpop.f32.mrb[5].mxu0  ;;  %v3313_v59 = vpop.f32.mrb[5].mxu1  ;;  %v1188_v60 = vcombine.high %v1178_v30, %v1178_v30  ;;  %v1189_v61 = vcombine.high %v1185_v5, %v1185_v5  ;;  %v4345_v62 = vsel %vm502_vm2, %v1164_v15, -1e+12  ;;  %v4349_v63 = vsel %vm502_vm2, %v1178_v30, -1e+12 }
 0x18c   : > { %v1039_v1 = vpop.f32.mrb[6].mxu0  ;;  %v1085_v2 = vpop.f32.mrb[6].mxu1  ;;  %v4355_v4 = vsel %vm502_vm2, %v1171_v29, -1e+12  ;;  %v4359_v6 = vsel %vm502_vm2, %v1185_v5, -1e+12  ;;  %v1433_v9 = vcombine.low %v4345_v62, %v4349_v63  ;;  %v1190_v22 = vcombine.high %v1036_v37, %v1036_v37 }
 0x18d   : > { %v4365_v12 = vsel %vm502_vm2, %v1186_v56, -1e+12  ;;  %v4369_v13 = vsel %vm502_vm2, %v1188_v60, -1e+12  ;;  %v1435_v15 = vcombine.low %v4355_v4, %v4359_v6  ;;  %v3308_v24 = vpop.f32.mrb[7].mxu0  ;;  %v3314_v25 = vpop.f32.mrb[7].mxu1  ;;  %v1197_v28 = vrot.slane %v1036_v37, %v4170_v19 }
 0x18e   : > { %v4375_v26 = vsel %vm502_vm2, %v1187_v57, -1e+12  ;;  %v1239_v29 = vcombine.high %v1082_v38, %v1082_v38  ;;  %v1246_v30 = vrot.slane %v1082_v38, %v4170_v19  ;;  %v1434_v32 = vcombine.low %v4365_v12, %v4369_v13 }
 0x18f   : > { %v1204_v33 = vrot.slane %v1190_v22, %v4170_v19  ;;  %v4384_v5 = vsel %vm502_vm2, %v1189_v61, -1e+12  ;;  %v1443_v56 = vrot.slane %v1433_v9, %v4170_v19  ;;  %v1205_v58 = vcombine.high %v1197_v28, %v1197_v28 }
 0x190   : > { %v1213_v57 = vrot.slane %v1197_v28, %v4170_v19  ;;  %v1253_v59 = vrot.slane %v1239_v29, %v4170_v19  ;;  %v1254_v37 = vcombine.high %v1246_v30, %v1246_v30  ;;  %v1262_v1 = vrot.slane %v1246_v30, %v4170_v19 }
 0x191   : > { %v1206_v60 = vcombine.high %v1204_v33, %v1204_v33  ;;  %v1220_v38 = vrot.slane %v1204_v33, %v4170_v19  ;;  %v1457_v2 = vrot.slane %v1435_v15, %v4170_v19  ;;  %v1227_v22 = vrot.slane %v1205_v58, %v4170_v19 }
 0x192   : > { %v1235_v24 = vcombine.high %v1213_v57, %v1213_v57  ;;  %v1255_v61 = vcombine.high %v1253_v59, %v1253_v59  ;;  %v1436_v9 = vcombine.low %v4375_v26, %v4384_v5  ;;  %v4398_v29 = vsel %vm502_vm2, %v1213_v57, -1e+12 }
 0x193   : > { %v1234_v25 = vrot.slane %v1206_v60, %v4170_v19  ;;  %v1236_v28 = vcombine.high %v1220_v38, %v1220_v38  ;;  %v1269_v33 = vrot.slane %v1253_v59, %v4170_v19  ;;  %v1237_v0 = vcombine.high %v1227_v22, %v1227_v22 }
 0x194   : > { %v4403_v15 = vsel %vm502_vm2, %v1227_v22, -1e+12  ;;  %v4407_v30 = vsel %vm502_vm2, %v1220_v38, -1e+12  ;;  %v1276_v58 = vrot.slane %v1254_v37, %v4170_v19  ;;  %v4412_v60 = vsel %vm502_vm2, %v1235_v24, -1e+12 }
 0x195   : > { %5262 = vst [vmem:[#allocation32_spill] sm:$0xff] %v4407_v30  ;;  %v1238_v20 = vcombine.high %v1234_v25, %v1234_v25  ;;  %5263 = vst [vmem:[#allocation33_spill] sm:$0xff] %v4412_v60  ;;  %v4416_v57 = vsel %vm502_vm2, %v1234_v25, -1e+12  ;;  %v4420_v59 = vsel %vm502_vm2, %v1236_v28, -1e+12  ;;  %v1482_v37 = vcombine.low %v4398_v29, %v4403_v15 }
 0x196   : > { %5264 = vst [vmem:[#allocation34_spill] sm:$0xff] %v4416_v57  ;;  %v4424_v22 = vsel %vm502_vm2, %v1237_v0, -1e+12  ;;  %v1283_v38 = vrot.slane %v1255_v61, %v4170_v19  ;;  %v1284_v3 = vcombine.high %v1262_v1, %v1262_v1  ;;  %v1484_v25 = vcombine.low %v4407_v30, %v4416_v57 }
 0x197   : > { %5265 = vst [vmem:[#allocation35_spill] sm:$0xff] %v4424_v22  ;;  %v1483_v24 = vcombine.low %v4412_v60, %v4424_v22  ;;  %v1285_v53 = vcombine.high %v1269_v33, %v1269_v33  ;;  %v1286_v51 = vcombine.high %v1276_v58, %v1276_v58  ;;  %v4435_v40 = vsel %vm502_vm2, %v1262_v1, -1e+12 }
 0x198   : > { %v1287_v28 = vcombine.high %v1283_v38, %v1283_v38  ;;  %v4439_v0 = vsel %vm502_vm2, %v1276_v58, -1e+12  ;;  %v4443_v61 = vsel %vm502_vm2, %v1284_v3, -1e+12  ;;  %v4451_v49 = vsel %vm502_vm2, %v1269_v33, -1e+12 }
 0x199   : > { %v4447_v50 = vsel %vm502_vm2, %v1286_v51, -1e+12  ;;  %v4455_v1 = vsel %vm502_vm2, %v1283_v38, -1e+12  ;;  %v1531_v58 = vcombine.low %v4435_v40, %v4439_v0  ;;  %v4461_v48 = vsel %vm502_vm2, %v1285_v53, -1e+12 }
 0x19a   : > { %v1532_v3 = vcombine.low %v4443_v61, %v4447_v50  ;;  %v1450_v51 = vrot.slane %v1434_v32, %v4170_v19  ;;  %v1464_v45 = vrot.slane %v1436_v9, %v4170_v19  ;;  %v1533_v33 = vcombine.low %v4451_v49, %v4455_v1 }
 0x19b   : > { %v5266_v38 = vcombine.high %v4306_v31, %v4306_v31  ;;  %v5267_v53 = vcombine.low %v4301_v27, %v4310_v34  ;;  %v5268_v32 = vcombine.low %v4314_v35, %v4328_v46  ;;  %v4488_v31 = vsel %vm502_vm2, %v1287_v28, -1e+12 }
 0x19c   : > { %v1465_v42 = vcombine.low %v1443_v56, %v1450_v51  ;;  %v1466_v41 = vcombine.low %v1457_v2, %v1464_v45  ;;  %v1534_v30 = vcombine.low %v4461_v48, %v4488_v31  ;;  %v1548_v22 = vrot.slane %v1532_v3, %v4170_v19 }
 0x19d   : > { %v4474_v44 = vsel %vm502_vm2, %v5266_v38, -1e+12  ;;  %v1394_v43 = vrot.slane %v5267_v53, %v4170_v19  ;;  %v1401_v9 = vrot.slane %v5268_v32, %v4170_v19  ;;  %v1541_v53 = vrot.slane %v1531_v58, %v4170_v19 }
 0x19e   : > { %v1387_v57 = vcombine.low %v4339_v52, %v4474_v44  ;;  %v1473_v60 = vrot.slane %v1465_v42, %v4170_v19  ;;  %v1480_v56 = vrot.slane %v1466_v41, %v4170_v19  ;;  %v5269_v45 = vcombine.low %v4318_v36, %v4333_v47 }
 0x19f   : > { %v1416_v38 = vcombine.low %v1394_v43, %v1401_v9  ;;  %v1555_v43 = vrot.slane %v1533_v33, %v4170_v19  ;;  %v1562_v51 = vrot.slane %v1534_v30, %v4170_v19  ;;  %v1563_v32 = vcombine.low %v1541_v53, %v1548_v22 }
 0x1a0   : > { %v1408_v2 = vrot.slane %v5269_v45, %v4170_v19  ;;  %v1415_v28 = vrot.slane %v1387_v57, %v4170_v19  ;;  %v4505_v58 = vsel %vm502_vm2, %v1238_v20, -1e+12  ;;  %v1481_v3 = vcombine.low %v1473_v60, %v1480_v56 }
 0x1a1   : > { %v1485_v41 = vcombine.low %v4420_v59, %v4505_v58  ;;  %v746_v9 = vcombine.low %v4293_v17, %v4322_v39  ;;  %v1424_v45 = vrot.slane %v1416_v38, %v4170_v19  ;;  %v1564_v57 = vcombine.low %v1555_v43, %v1562_v51 }
 0x1a2   : > { %v1417_v42 = vcombine.low %v1408_v2, %v1415_v28  ;;  %v1492_v33 = vrot.slane %v1482_v37, %v4170_v19  ;;  %v1499_v30 = vrot.slane %v1483_v24, %v4170_v19  ;;  %v1587_v22 = vsel %vm503_vm3, %v1481_v3, -inf }
 0x1a3   : > { %v1506_v20 = vrot.slane %v1484_v25, %v4170_v19  ;;  %v1513_v60 = vrot.slane %v1485_v41, %v4170_v19  ;;  %1588 = vmax.xlane.f32.xlu1 %v1587_v22  ;;  %v1571_v53 = vrot.slane %v1563_v32, %v4170_v19  ;;  %v1578_v17 = vrot.slane %v1564_v57, %v4170_v19  ;;  %v4530_v41 = vld [vmem:[%s4135_s6] sm:$0xff] }
 0x1a4   : > { %v1431_v23 = vrot.slane %v1417_v42, %v4170_v19  ;;  %v1514_v39 = vcombine.low %v1492_v33, %v1499_v30  ;;  %v5270_v37 = vcombine.low %v4279_v54, %v4282_v55  ;;  %v760_v2 = vrot.slane %v746_v9, %v4170_v19 }
 0x1a5   : > { %v1515_v56 = vcombine.low %v1506_v20, %v1513_v60  ;;  %v1579_v28 = vcombine.low %v1571_v53, %v1578_v17  ;;  %v504_v55 = vsel %vm503_vm3, %v4530_v41, 0.0 }
 0x1a6   : > { %v1432_v38 = vcombine.low %v1424_v45, %v1431_v23  ;;  %v753_v24 = vrot.slane %v5270_v37, %v4170_v19  ;;  %v1522_v43 = vrot.slane %v1514_v39, %v4170_v19 }
 0x1a7   : > { %v1529_v51 = vrot.slane %v1515_v56, %v4170_v19  ;;  %v1593_v32 = vsel %vm503_vm3, %v1579_v28, -inf }
 0x1a8   : > { %v1584_v25 = vsel %vm503_vm3, %v1432_v38, -inf  ;;  %v761_v42 = vcombine.low %v753_v24, %v760_v2 }
 0x1a9   : > { %1585 = vmax.xlane.f32.xlu0 %v1584_v25  ;;  %v1530_v3 = vcombine.low %v1522_v43, %v1529_v51 }
 0x1aa   : > { %v763_v54 = vsel %vm503_vm3, %v761_v42, 0.0 }
 0x1ab   : > { %v1590_v45 = vsel %vm503_vm3, %v1530_v3, -inf }
 0x1ac   : > { %1591 = vmax.xlane.f32.xlu1 %v1590_v45 }
 0x1ad   : > { %1594 = vmax.xlane.f32.xlu0 %v1593_v32 }
 0x1b0   : > { %505 = vadd.xlane.f32.xlu1 %v504_v55 }
 0x1b1   : > { %764 = vadd.xlane.f32.xlu0 %v763_v54 }
 0x230   : > { %v1589_v9 = vpop.xlane.xlu1 %1588 }
 0x231   : > { %v1635_v57 = vrot.slane %v1589_v9, %v4225_v7  ;;  %v1639_v33 = vrot.slane %v1589_v9, %v4228_v8  ;;  %v1643_v30 = vrot.slane %v1589_v9, %v4231_v10  ;;  %v1647_v22 = vrot.slane %v1589_v9, %v4234_v11 }
 0x232   : > { %v1651_v23 = vrot.slane %v1589_v9, %v4239_v14  ;;  %v1655_v20 = vrot.slane %v1589_v9, %v4243_v16  ;;  %v1659_v17 = vrot.slane %v1589_v9, %v4247_v18  ;;  %v1663_v38 = vrot.slane %v1589_v9, %v4250_v21 }
 0x233   : > { %v1768_v60 = vsub.f32 %v4345_v62, %v1635_v57  ;;  %v1769_v53 = vsub.f32 %v4349_v63, %v1639_v33  ;;  %v1770_v39 = vsub.f32 %v4365_v12, %v1643_v30  ;;  %v1771_v56 = vsub.f32 %v4369_v13, %v1647_v22 }
 0x234   : > { %v1772_v37 = vsub.f32 %v4355_v4, %v1651_v23  ;;  %v1773_v24 = vsub.f32 %v4359_v6, %v1655_v20  ;;  %v1774_v25 = vsub.f32 %v4375_v26, %v1659_v17  ;;  %v1775_v62 = vsub.f32 %v4384_v5, %v1663_v38 }
 0x235   : > { %v1808_v2 = vmul.f32 1.442695, %v1768_v60  ;;  %v1810_v28 = vmul.f32 1.442695, %v1769_v53  ;;  %v1812_v43 = vmul.f32 1.442695, %v1770_v39 }
 0x236   : > { %v1814_v63 = vmul.f32 1.442695, %v1771_v56  ;;  %v1816_v51 = vmul.f32 1.442695, %v1772_v37  ;;  %v1586_v32 = vpop.xlane.xlu0 %1585  ;;  %v1818_v12 = vmul.f32 1.442695, %v1773_v24 }
 0x237   : > { %3444 = vpow2.f32 %v1808_v2  ;;  %v1820_v3 = vmul.f32 1.442695, %v1774_v25  ;;  %v1822_v13 = vmul.f32 1.442695, %v1775_v62  ;;  %v1603_v4 = vrot.slane %v1586_v32, %v4225_v7 }
 0x238   : > { %3446 = vpow2.f32 %v1810_v28  ;;  %v1607_v6 = vrot.slane %v1586_v32, %v4228_v8  ;;  %v1611_v26 = vrot.slane %v1586_v32, %v4231_v10  ;;  %v1615_v42 = vrot.slane %v1586_v32, %v4234_v11 }
 0x239   : > { %3448 = vpow2.f32 %v1812_v43  ;;  %v1760_v5 = vsub.f32 %v4301_v27, %v1603_v4  ;;  %v1619_v55 = vrot.slane %v1586_v32, %v4239_v14  ;;  %v1623_v9 = vrot.slane %v1586_v32, %v4243_v16 }
 0x23a   : > { %3450 = vpow2.f32 %v1814_v63  ;;  %v1761_v45 = vsub.f32 %v4310_v34, %v1607_v6  ;;  %v1627_v57 = vrot.slane %v1586_v32, %v4247_v18  ;;  %v1762_v30 = vsub.f32 %v4314_v35, %v1611_v26  ;;  %v1595_v23 = vpop.xlane.xlu0 %1594 }
 0x23b   : > { %3452 = vpow2.f32 %v1816_v51  ;;  %v1792_v27 = vmul.f32 1.442695, %v1760_v5  ;;  %v1631_v34 = vrot.slane %v1586_v32, %v4250_v21  ;;  %v1763_v60 = vsub.f32 %v4328_v46, %v1615_v42 }
 0x23c   : > { %3454 = vpow2.f32 %v1818_v12  ;;  %v1794_v17 = vmul.f32 1.442695, %v1761_v45  ;;  %v1764_v38 = vsub.f32 %v4318_v36, %v1619_v55  ;;  %v1765_v35 = vsub.f32 %v4333_v47, %v1623_v9 }
 0x23d   : > { %3456 = vpow2.f32 %v1820_v3  ;;  %v1766_v56 = vsub.f32 %v4339_v52, %v1627_v57  ;;  %v1699_v2 = vrot.slane %v1595_v23, %v4225_v7  ;;  %v1703_v46 = vrot.slane %v1595_v23, %v4228_v8  ;;  %v4607_v57 = vpop.xlane.xlu1 %1591 }
 0x23e   : > { %3458 = vpow2.f32 %v1822_v13  ;;  %v1796_v25 = vmul.f32 1.442695, %v1762_v30  ;;  %v1707_v36 = vrot.slane %v1595_v23, %v4231_v10  ;;  %v1767_v63 = vsub.f32 %v4474_v44, %v1631_v34 }
 0x23f   : > { %3460 = vpow2.f32 %v1792_v27  ;;  %v1711_v51 = vrot.slane %v1595_v23, %v4234_v11  ;;  %v1798_v32 = vmul.f32 1.442695, %v1763_v60  ;;  %v1715_v12 = vrot.slane %v1595_v23, %v4239_v14 }
 0x240   : > { %3462 = vpow2.f32 %v1794_v17  ;;  %v1719_v3 = vrot.slane %v1595_v23, %v4243_v16  ;;  %v1723_v13 = vrot.slane %v1595_v23, %v4247_v18  ;;  %v1800_v5 = vmul.f32 1.442695, %v1764_v38 }
 0x241   : > { %v4558_v54 = vpop.eup %3444  ;;  %3464 = vpow2.f32 %v1796_v25  ;;  %v1727_v44 = vrot.slane %v1595_v23, %v4250_v21  ;;  %v1784_v42 = vsub.f32 %v4435_v40, %v1699_v2  ;;  %v1785_v45 = vsub.f32 %v4439_v0, %v1703_v46 }
 0x242   : > { %v4563_v33 = vpop.eup %3446  ;;  %v1786_v55 = vsub.f32 %v4443_v61, %v1707_v36  ;;  %v1787_v9 = vsub.f32 %v4447_v50, %v1711_v51  ;;  %3466 = vpow2.f32 %v1798_v32  ;;  %v1802_v27 = vmul.f32 1.442695, %v1765_v35 }
 0x243   : > { %v4566_v22 = vpop.eup %3448  ;;  %v1937_v53 = vcombine.low %v4558_v54, %v4563_v33  ;;  %v1788_v34 = vsub.f32 %v4451_v49, %v1715_v12  ;;  %v1789_v60 = vsub.f32 %v4455_v1, %v1719_v3  ;;  %v1790_v23 = vsub.f32 %v4461_v48, %v1723_v13 }
 0x244   : > { %v4568_v20 = vpop.eup %3450  ;;  %3468 = vpow2.f32 %v1800_v5  ;;  %v1806_v61 = vmul.f32 1.442695, %v1767_v63  ;;  %v1791_v50 = vsub.f32 %v4488_v31, %v1727_v44  ;;  %v1667_v17 = vrot.slane %v4607_v57, %v4225_v7  ;;  %v5272_v5 = vld [vmem:[#allocation35_spill] sm:$0xff] }
 0x245   : > { %v4574_v39 = vpop.eup %3452  ;;  %v1938_v37 = vcombine.low %v4566_v22, %v4568_v20  ;;  %v1947_v28 = vrot.slane %v1937_v53, %v4170_v19  ;;  %v1804_v53 = vmul.f32 1.442695, %v1766_v56  ;;  %v1671_v38 = vrot.slane %v4607_v57, %v4228_v8 }
 0x246   : > { %v4581_v24 = vpop.eup %3454  ;;  %v1840_v35 = vmul.f32 1.442695, %v1784_v42  ;;  %v1675_v49 = vrot.slane %v4607_v57, %v4231_v10  ;;  %3470 = vpow2.f32 %v1802_v27  ;;  %v1842_v1 = vmul.f32 1.442695, %v1785_v45  ;;  %v5273_v45 = vld [vmem:[#allocation32_spill] sm:$0xff] }
 0x247   : > { %v4586_v43 = vpop.eup %3456  ;;  %v1939_v47 = vcombine.low %v4574_v39, %v4581_v24  ;;  %v1954_v52 = vrot.slane %v1938_v37, %v4170_v19  ;;  %v1679_v37 = vrot.slane %v4607_v57, %v4234_v11  ;;  %v1683_v31 = vrot.slane %v4607_v57, %v4239_v14 }
 0x248   : > { %v4592_v62 = vpop.eup %3458  ;;  %3472 = vpow2.f32 %v1804_v53  ;;  %v1844_v2 = vmul.f32 1.442695, %v1786_v55  ;;  %v1846_v36 = vmul.f32 1.442695, %v1787_v9  ;;  %v1848_v63 = vmul.f32 1.442695, %v1788_v34 }
 0x249   : > { %v1940_v4 = vcombine.low %v4586_v43, %v4592_v62  ;;  %v1961_v6 = vrot.slane %v1939_v47, %v4170_v19  ;;  %v1969_v26 = vcombine.low %v1947_v28, %v1954_v52  ;;  %v4622_v56 = vpop.eup %3460  ;;  %v1687_v28 = vrot.slane %v4607_v57, %v4243_v16  ;;  %v5274_v34 = vld [vmem:[#allocation34_spill] sm:$0xff] }
 0x24a   : > { %v4628_v46 = vpop.eup %3462  ;;  %3474 = vpow2.f32 %v1806_v61  ;;  %v1776_v47 = vsub.f32 %v4398_v29, %v1667_v17  ;;  %v1777_v52 = vsub.f32 %v4403_v15, %v1671_v38  ;;  %v1850_v3 = vmul.f32 1.442695, %v1789_v60 }
 0x24b   : > { %v1968_v30 = vrot.slane %v1940_v4, %v4170_v19  ;;  %v1977_v0 = vrot.slane %v1969_v26, %v4170_v19  ;;  %3476 = vpow2.f32 %v1840_v35  ;;  %v4634_v51 = vpop.eup %3464  ;;  %v1888_v12 = vcombine.low %v4622_v56, %v4628_v46  ;;  %v5271_v4 = vld [vmem:[#allocation33_spill] sm:$0xff] }
 0x24c   : > { %3478 = vpow2.f32 %v1842_v1  ;;  %v1691_v13 = vrot.slane %v4607_v57, %v4247_v18  ;;  %v1852_v29 = vmul.f32 1.442695, %v1790_v23  ;;  %v4642_v15 = vpop.eup %3466  ;;  %v1695_v26 = vrot.slane %v4607_v57, %v4250_v21 }
 0x24d   : > { %v1970_v40 = vcombine.low %v1961_v6, %v1968_v30  ;;  %v1778_v6 = vsub.f32 %v5271_v4, %v1675_v49  ;;  %3480 = vpow2.f32 %v1844_v2  ;;  %v1779_v44 = vsub.f32 %v5272_v5, %v1679_v37 }
 0x24e   : > { %3482 = vpow2.f32 %v1846_v36  ;;  %v1854_v42 = vmul.f32 1.442695, %v1791_v50  ;;  %v1780_v55 = vsub.f32 %v5273_v45, %v1683_v31  ;;  %v1889_v9 = vcombine.low %v4634_v51, %v4642_v15  ;;  %v4650_v27 = vpop.eup %3468 }
 0x24f   : > { %v1984_v48 = vrot.slane %v1970_v40, %v4170_v19  ;;  %3484 = vpow2.f32 %v1848_v63  ;;  %v1824_v30 = vmul.f32 1.442695, %v1776_v47  ;;  %v1781_v60 = vsub.f32 %v5274_v34, %v1687_v28 }
 0x250   : > { %v1898_v23 = vrot.slane %v1888_v12, %v4170_v19  ;;  %3486 = vpow2.f32 %v1850_v3  ;;  %v1826_v53 = vmul.f32 1.442695, %v1777_v52  ;;  %v1782_v57 = vsub.f32 %v4420_v59, %v1691_v13  ;;  %v4656_v61 = vpop.eup %3470 }
 0x251   : > { %v1985_v25 = vcombine.low %v1977_v0, %v1984_v48  ;;  %v1905_v40 = vrot.slane %v1889_v9, %v4170_v19  ;;  %3488 = vpow2.f32 %v1852_v29  ;;  %v1828_v0 = vmul.f32 1.442695, %v1778_v6 }
 0x252   : > { %v1783_v50 = vsub.f32 %v4505_v58, %v1695_v26  ;;  %3490 = vpow2.f32 %v1854_v42  ;;  %v1830_v17 = vmul.f32 1.442695, %v1779_v44  ;;  %v4659_v38 = vpop.eup %3472  ;;  %v1890_v35 = vcombine.low %v4650_v27, %v4656_v61 }
 0x253   : > { %v2091_v32 = vsel %vm503_vm3, %v1985_v25, 0.0  ;;  %3492 = vpow2.f32 %v1824_v30  ;;  %v1832_v49 = vmul.f32 1.442695, %v1780_v55  ;;  %v1920_v59 = vcombine.low %v1898_v23, %v1905_v40 }
 0x254   : > { %2092 = vadd.xlane.f32.xlu0 %v2091_v32  ;;  %v4663_v48 = vpop.eup %3474  ;;  %3494 = vpow2.f32 %v1826_v53  ;;  %v1834_v1 = vmul.f32 1.442695, %v1781_v60  ;;  %v1912_v58 = vrot.slane %v1890_v35, %v4170_v19  ;;  %v1836_v2 = vmul.f32 1.442695, %v1782_v57 }
 0x255   : > { %v4665_v37 = vpop.eup %3476  ;;  %v1891_v31 = vcombine.low %v4659_v38, %v4663_v48  ;;  %3496 = vpow2.f32 %v1828_v0  ;;  %v1838_v25 = vmul.f32 1.442695, %v1783_v50  ;;  %v1928_v32 = vrot.slane %v1920_v59, %v4170_v19 }
 0x256   : > { %v4670_v28 = vpop.eup %3478  ;;  %3498 = vpow2.f32 %v1830_v17 }
 0x257   : > { %v4672_v36 = vpop.eup %3480  ;;  %v1919_v47 = vrot.slane %v1891_v31, %v4170_v19  ;;  %v2035_v52 = vcombine.low %v4665_v37, %v4670_v28  ;;  %3500 = vpow2.f32 %v1832_v49 }
 0x258   : > { %v4677_v63 = vpop.eup %3482  ;;  %3502 = vpow2.f32 %v1834_v1 }
 0x259   : > { %v4680_v12 = vpop.eup %3484  ;;  %v1921_v3 = vcombine.low %v1912_v58, %v1919_v47  ;;  %v2036_v13 = vcombine.low %v4672_v36, %v4677_v63  ;;  %v2045_v4 = vrot.slane %v2035_v52, %v4170_v19  ;;  %3504 = vpow2.f32 %v1836_v2 }
 0x25a   : > { %v4685_v6 = vpop.eup %3486  ;;  %3506 = vpow2.f32 %v1838_v25 }
 0x25b   : > { %5275 = vst [vmem:[#allocation33_spill] sm:$0xff] %v4685_v6  ;;  %v4687_v29 = vpop.eup %3488  ;;  %v1935_v26 = vrot.slane %v1921_v3, %v4170_v19  ;;  %v2037_v5 = vcombine.low %v4680_v12, %v4685_v6  ;;  %v2052_v44 = vrot.slane %v2036_v13, %v4170_v19 }
 0x25c   : > { %5276 = vst [vmem:[#allocation35_spill] sm:$0xff] %v4687_v29  ;;  %v4693_v42 = vpop.eup %3490 }
 0x25d   : > { %5277 = vst [vmem:[#allocation32_spill] sm:$0xff] %v4693_v42  ;;  %v4695_v45 = vpop.eup %3492  ;;  %v1936_v55 = vcombine.low %v1928_v32, %v1935_v26  ;;  %v2038_v9 = vcombine.low %v4687_v29, %v4693_v42  ;;  %v2059_v30 = vrot.slane %v2037_v5, %v4170_v19  ;;  %v2067_v34 = vcombine.low %v2045_v4, %v2052_v44  ;;  %v5287_v42 = vld [vmem:[#allocation25_spill] sm:$0xff] }
 0x25e   : > { %v4700_v60 = vpop.eup %3494 }
 0x25f   : > { %5278 = vst [vmem:[#allocation34_spill] sm:$0xff] %v4700_v60  ;;  %v4702_v23 = vpop.eup %3496  ;;  %v2088_v53 = vsel %vm503_vm3, %v1936_v55, 0.0  ;;  %v2066_v57 = vrot.slane %v2038_v9, %v4170_v19  ;;  %v1986_v40 = vcombine.low %v4695_v45, %v4700_v60  ;;  %v2075_v35 = vrot.slane %v2067_v34, %v4170_v19  ;;  %v495_v34 = vld [vmem:[%s4132_s26] sm:$0xff] }
 0x260   : > { %5279 = vst [vmem:[#allocation36_spill] sm:$0xff] %v4702_v23  ;;  %v4708_v0 = vpop.eup %3498  ;;  %2089 = vadd.xlane.f32.xlu1 %v2088_v53  ;;  %v496_v53 = vld [vmem:[%s4132_s26 + $0x8] sm:$0xff] }
 0x261   : > { %5280 = vst [vmem:[#allocation37_spill] sm:$0xff] %v4708_v0  ;;  %v4710_v50 = vpop.eup %3500  ;;  %v2068_v17 = vcombine.low %v2059_v30, %v2066_v57  ;;  %v1987_v49 = vcombine.low %v4702_v23, %v4708_v0  ;;  %v1996_v59 = vrot.slane %v1986_v40, %v4170_v19  ;;  %v2660_v57 = vpack.c.bf16 %v495_v34, %v495_v34 }
 0x262   : > { %5281 = vst [vmem:[#allocation38_spill] sm:$0xff] %v4710_v50  ;;  %v4716_v1 = vpop.eup %3502  ;;  %v2661_v40 = vpack.c.bf16 %v496_v53, %v496_v53 }
 0x263   : > { %5282 = vst [vmem:[#allocation39_spill] sm:$0xff] %v4716_v1  ;;  %v4718_v31 = vpop.eup %3504  ;;  %v2082_v58 = vrot.slane %v2068_v17, %v4170_v19  ;;  %v1988_v2 = vcombine.low %v4710_v50, %v4716_v1  ;;  %v2003_v25 = vrot.slane %v1987_v49, %v4170_v19  ;;  %v2707_v17 = vsel %vm2705_vm4, %v2660_v57, 0  ;;  %v5290_v50 = vld [vmem:[#allocation28_spill] sm:$0xff] }
 0x264   : > { %5283 = vst [vmem:[#allocation40_spill] sm:$0xff] %v4718_v31  ;;  %v4724_v47 = vpop.eup %3506  ;;  %3316 = vmatpush3.bf16.msra.mxu0 %v2707_v17  ;;  %v5285_v49 = vmov 0.0  }
 0x265   : > { %5284 = vst [vmem:[#allocation41_spill] sm:$0xff] %v4724_v47  ;;  %v2083_v52 = vcombine.low %v2075_v35, %v2082_v58  ;;  %v1989_v32 = vcombine.low %v4718_v31, %v4724_v47  ;;  %v2010_v3 = vrot.slane %v1988_v2, %v4170_v19  ;;  %v2018_v13 = vcombine.low %v1996_v59, %v2003_v25  ;;  %v506_v59 = vpop.xlane.xlu1 %505  ;;  %v765_v2 = vpop.xlane.xlu0 %764 }
 0x266   : > { %v2784_v35 = vsel %vm2705_vm4, %v2661_v40, 0  ;;  %3327 = vmatprep.subr.bf16.mxu0 %v5285_v49  ;;  %v507_v58 = vadd.f32 1e-06, %v506_v59 }
 0x267   : > { %v2097_v4 = vsel %vm503_vm3, %v2083_v52, 0.0  ;;  %v2017_v26 = vrot.slane %v1989_v32, %v4170_v19  ;;  %v2026_v44 = vrot.slane %v2018_v13, %v4170_v19  ;;  %3322 = vmatpush3.bf16.msra.mxu1 %v2784_v35 }
 0x268   : > { %2098 = vadd.xlane.f32.xlu0 %v2097_v4  ;;  %3333 = vmatprep.subr.bf16.mxu1 %v5285_v49  ;;  %3508 = vrcp.f32 %v507_v58  ;;  %v5288_v49 = vld [vmem:[#allocation26_spill] sm:$0xff] }
 0x269   : > { %v2019_v5 = vcombine.low %v2010_v3, %v2017_v26  ;;  %3510 = vrcp.f32 %v765_v2 }
 0x26b   : > { %v2033_v55 = vrot.slane %v2019_v5, %v4170_v19 }
 0x26d   : > { %v2034_v9 = vcombine.low %v2026_v44, %v2033_v55 }
 0x26f   : > { %v2094_v30 = vsel %vm503_vm3, %v2034_v9, 0.0 }
 0x270   : > { %2095 = vadd.xlane.f32.xlu1 %v2094_v30 }
 0x272   : > { %v3509_v25 = vpop.eup %3508 }
 0x273   : > { %v509_v52 = vmul.f32 %v3509_v25, %v4530_v41  ;;  %v3511_v13 = vpop.eup %3510 }
 0x274   : > { %v771_v26 = vrot.slane %v3511_v13, %v4225_v7  ;;  %v775_v5 = vrot.slane %v3511_v13, %v4228_v8  ;;  %v779_v9 = vrot.slane %v3511_v13, %v4231_v10  ;;  %v783_v53 = vrot.slane %v3511_v13, %v4234_v11 }
 0x275   : > { %v824_v32 = vmul.f32 0.34, %v509_v52  ;;  %v787_v57 = vrot.slane %v3511_v13, %v4239_v14  ;;  %v791_v40 = vrot.slane %v3511_v13, %v4243_v16  ;;  %v795_v35 = vrot.slane %v3511_v13, %v4247_v18 }
 0x276   : > { %v799_v2 = vrot.slane %v3511_v13, %v4250_v21  ;;  %v809_v29 = vmul.f32 %v5287_v42, %v775_v5  ;;  %v810_v47 = vmul.f32 %v5288_v49, %v779_v9  ;;  %v5289_v13 = vld [vmem:[#allocation27_spill] sm:$0xff]  ;;  %v5291_v42 = vld [vmem:[#allocation29_spill] sm:$0xff] }
 0x277   : > { %v826_v3 = vcombine.high %v824_v32, %v824_v32  ;;  %v833_v4 = vrot.slane %v824_v32, %v4170_v19  ;;  %v5286_v32 = vld [vmem:[#allocation24_spill] sm:$0xff]  ;;  %v813_v5 = vmul.f32 %v5291_v42, %v791_v40 }
 0x279   : > { %v840_v44 = vrot.slane %v826_v3, %v4170_v19  ;;  %v841_v59 = vcombine.high %v833_v4, %v833_v4  ;;  %v808_v3 = vmul.f32 %v5286_v32, %v771_v26  ;;  %v849_v31 = vrot.slane %v833_v4, %v4170_v19  ;;  %v5292_v4 = vld [vmem:[#allocation30_spill] sm:$0xff] }
 0x27a   : > { %v814_v9 = vmul.f32 %v5292_v4, %v795_v35  ;;  %v821_v42 = vmul.f32 0.33, %v813_v5 }
 0x27b   : > { %v842_v25 = vcombine.high %v840_v44, %v840_v44  ;;  %v863_v26 = vrot.slane %v841_v59, %v4170_v19  ;;  %v871_v0 = vcombine.high %v849_v31, %v849_v31  ;;  %v818_v59 = vmul.f32 0.33, %v810_v47 }
 0x27d   : > { %v870_v49 = vrot.slane %v842_v25, %v4170_v19 }
 0x27f   : > { %v874_v23 = vcombine.high %v870_v49, %v870_v49  ;;  %v4784_v5 = vadd.f32 %v870_v49, %v821_v42 }
 0x2e1   : > { %v2093_v55 = vpop.xlane.xlu0 %2092 }
 0x2e2   : > { %v2139_v30 = vrot.slane %v2093_v55, %v4225_v7  ;;  %v2143_v34 = vrot.slane %v2093_v55, %v4228_v8  ;;  %v2147_v41 = vrot.slane %v2093_v55, %v4231_v10  ;;  %v2151_v17 = vrot.slane %v2093_v55, %v4234_v11 }
 0x2e3   : > { %v2155_v58 = vrot.slane %v2093_v55, %v4239_v14  ;;  %v2159_v52 = vrot.slane %v2093_v55, %v4243_v16  ;;  %v2163_v6 = vrot.slane %v2093_v55, %v4247_v18  ;;  %v2167_v1 = vrot.slane %v2093_v55, %v4250_v21  ;;  %v5293_v55 = vld [vmem:[#allocation31_spill] sm:$0xff] }
 0x2e4   : > { %3512 = vrcp.f32 %v2139_v30  ;;  %v811_v30 = vmul.f32 %v5289_v13, %v783_v53  ;;  %v815_v32 = vmul.f32 %v5293_v55, %v799_v2  ;;  %v497_v53 = vld [vmem:[%s4132_s26 + $0x10] sm:$0xff]  ;;  %v873_v13 = vcombine.high %v863_v26, %v863_v26 }
 0x2e5   : > { %3514 = vrcp.f32 %v2143_v34  ;;  %v812_v34 = vmul.f32 %v5290_v50, %v787_v57  ;;  %v498_v50 = vld [vmem:[%s4132_s26 + $0x18] sm:$0xff]  ;;  %v817_v57 = vmul.f32 0.33, %v809_v29  ;;  %v2662_v35 = vpack.c.bf16 %v497_v53, %v497_v53  ;;  %s3700_s26 = sshll.u32 %s3829_s19, 4  ;;  %s3701_s26 = int_to_ptr.vmem [resolvable:$false] %s3700_s26 }
 0x2e6   : > { %3516 = vrcp.f32 %v2147_v41  ;;  %v856_v41 = vrot.slane %v840_v44, %v4170_v19  ;;  %v823_v60 = vmul.f32 0.33, %v815_v32  ;;  %v2663_v4 = vpack.c.bf16 %v498_v50, %v498_v50  ;;  %s3702_s8 = scalar_lea.vmem %s3701_s26, 1024  ;;  %p3703_p2 = scmp.lt.s32.totalorder %s5087_s20, %s3701_s26 }
 0x2e7   : > { %3518 = vrcp.f32 %v2151_v17  ;;  %v816_v17 = vmul.f32 0.33, %v808_v3  ;;  %v820_v40 = vmul.f32 0.33, %v812_v34  ;;  %v4775_v3 = vadd.f32 %v863_v26, %v817_v57  ;;  %p3704_p5 = scmp.lt.s32.totalorder %s3702_s8, %s3696_s22 }
 0x2e8   : > { %3520 = vrcp.f32 %v2155_v58  ;;  %v819_v58 = vmul.f32 0.33, %v811_v30  ;;  %v872_v44 = vcombine.high %v856_v41, %v856_v41  ;;  %v4794_v50 = vsel %vm2705_vm4, %v2662_v35, 0 }
 0x2e9   : > { %3522 = vrcp.f32 %v2159_v52  ;;  %v822_v52 = vmul.f32 0.33, %v814_v9  ;;  %v4782_v34 = vadd.f32 %v856_v41, %v820_v40  ;;  %v4797_v41 = vsel %vm2705_vm4, %v2663_v4, 0  ;;  %p3705_p7 = por %p3704_p5, %p3703_p2 }
 0x2ea   : > { %3524 = vrcp.f32 %v2163_v6  ;;  %v4773_v6 = vadd.f32 %v849_v31, %v816_v17  ;;  %v4780_v30 = vadd.f32 %v873_v13, %v819_v58  ;;  %v4789_v31 = vadd.f32 %v874_v23, %v823_v60  ;;  %5294 = vst [vmem:[#allocation24_spill] sm:$0xff] %v4797_v41 }
 0x2eb   : > { %3526 = vrcp.f32 %v2167_v1  ;;  %v4777_v1 = vadd.f32 %v871_v0, %v818_v59  ;;  %v4787_v32 = vadd.f32 %v872_v44, %v822_v52  ;;  %p3706_p3 = pnand %p3705_p7, %p3699_p11 }
 0x2ed   : > { %v2090_v58 = vpop.xlane.xlu1 %2089 }
 0x2ee   : > { %v3513_v25 = vpop.eup %3512  ;;  %v2107_v44 = vrot.slane %v2090_v58, %v4225_v7  ;;  %v2115_v52 = vrot.slane %v2090_v58, %v4231_v10  ;;  %v2123_v35 = vrot.slane %v2090_v58, %v4239_v14  ;;  %v2127_v4 = vrot.slane %v2090_v58, %v4243_v16 }
 0x2ef   : > { %v3515_v2 = vpop.eup %3514  ;;  %v2281_v29 = vmul.f32 %v3513_v25, %v4558_v54  ;;  %v2111_v25 = vrot.slane %v2090_v58, %v4228_v8 }
 0x2f0   : > { %v3517_v47 = vpop.eup %3516  ;;  %v2283_v9 = vmul.f32 %v3515_v2, %v4563_v33  ;;  %v2131_v2 = vrot.slane %v2090_v58, %v4247_v18  ;;  %3528 = vrcp.f32 %v2107_v44 }
 0x2f1   : > { %v3519_v55 = vpop.eup %3518  ;;  %v2285_v26 = vmul.f32 %v3517_v47, %v4566_v22  ;;  %v2572_v0 = vmul.f32 0.33, %v2281_v29  ;;  %3530 = vrcp.f32 %v2111_v25 }
 0x2f2   : > { %v3521_v17 = vpop.eup %3520  ;;  %v2409_v53 = vcombine.low %v2281_v29, %v2283_v9  ;;  %v2287_v54 = vmul.f32 %v3519_v55, %v4568_v20  ;;  %v2573_v33 = vmul.f32 0.33, %v2283_v9  ;;  %v2135_v29 = vrot.slane %v2090_v58, %v4250_v21 }
 0x2f3   : > { %v3523_v49 = vpop.eup %3522  ;;  %v2289_v57 = vmul.f32 %v3521_v17, %v4574_v39  ;;  %v2574_v59 = vmul.f32 0.33, %v2285_v26  ;;  %v4801_v60 = vadd.f32 %v2572_v0, %v4773_v6  ;;  %v2119_v39 = vrot.slane %v2090_v58, %v4234_v11 }
 0x2f4   : > { %v3525_v22 = vpop.eup %3524  ;;  %v2419_v23 = vrot.slane %v2409_v53, %v4170_v19  ;;  %v2291_v20 = vmul.f32 %v3523_v49, %v4581_v24  ;;  %v2410_v13 = vcombine.low %v2285_v26, %v2287_v54  ;;  %v2575_v40 = vmul.f32 0.33, %v2287_v54 }
 0x2f5   : > { %v3527_v42 = vpop.eup %3526  ;;  %v2293_v24 = vmul.f32 %v3525_v22, %v4586_v43  ;;  %v2576_v26 = vmul.f32 0.33, %v2289_v57  ;;  %3532 = vrcp.f32 %v2115_v52  ;;  %v4818_v58 = vadd.f32 %v2573_v33, %v4775_v3  ;;  %v2099_v22 = vpop.xlane.xlu0 %2098 }
 0x2f6   : > { %v2295_v47 = vmul.f32 %v3527_v42, %v4592_v62  ;;  %v2411_v9 = vcombine.low %v2289_v57, %v2291_v20  ;;  %v2426_v55 = vrot.slane %v2410_v13, %v4170_v19  ;;  %v2577_v0 = vmul.f32 0.33, %v2291_v20 }
 0x2f7   : > { %v2578_v54 = vmul.f32 0.33, %v2293_v24  ;;  %3534 = vrcp.f32 %v2119_v39  ;;  %v4822_v62 = vadd.f32 %v2574_v59, %v4777_v1  ;;  %v4825_v57 = vadd.f32 %v2575_v40, %v4780_v30 }
 0x2f8   : > { %v2412_v17 = vcombine.low %v2293_v24, %v2295_v47  ;;  %v2433_v53 = vrot.slane %v2411_v9, %v4170_v19  ;;  %v2441_v49 = vcombine.low %v2419_v23, %v2426_v55  ;;  %v2579_v41 = vmul.f32 0.33, %v2295_v47 }
 0x2f9   : > { %3536 = vrcp.f32 %v2123_v35  ;;  %v4829_v13 = vadd.f32 %v2576_v26, %v4782_v34  ;;  %v4832_v23 = vadd.f32 %v2577_v0, %v4784_v5  ;;  %v2203_v33 = vrot.slane %v2099_v22, %v4225_v7 }
 0x2fa   : > { %v2440_v43 = vrot.slane %v2412_v17, %v4170_v19  ;;  %3538 = vrcp.f32 %v2127_v4  ;;  %v2449_v20 = vrot.slane %v2441_v49, %v4170_v19  ;;  %v2207_v42 = vrot.slane %v2099_v22, %v4228_v8  ;;  %v3529_v24 = vpop.eup %3528 }
 0x2fb   : > { %3540 = vrcp.f32 %v2131_v2  ;;  %v2211_v59 = vrot.slane %v2099_v22, %v4231_v10  ;;  %v2215_v40 = vrot.slane %v2099_v22, %v4234_v11  ;;  %v2219_v44 = vrot.slane %v2099_v22, %v4239_v14  ;;  %v3531_v26 = vpop.eup %3530 }
 0x2fc   : > { %3542 = vrcp.f32 %v2135_v29  ;;  %v2223_v25 = vrot.slane %v2099_v22, %v4243_v16  ;;  %v2227_v52 = vrot.slane %v2099_v22, %v4247_v18  ;;  %v2231_v39 = vrot.slane %v2099_v22, %v4250_v21 }
 0x2fd   : > { %3544 = vrcp.f32 %v2203_v33  ;;  %v2442_v35 = vcombine.low %v2433_v53, %v2440_v43  ;;  %v4843_v4 = vadd.f32 %v2578_v54, %v4787_v32  ;;  %v4846_v2 = vadd.f32 %v2579_v41, %v4789_v31 }
 0x2fe   : > { %3546 = vrcp.f32 %v2207_v42  ;;  %v2636_v29 = vpack.c.bf16 %v4801_v60, %v4801_v60  ;;  %v2637_v9 = vpack.c.bf16 %v4818_v58, %v4818_v58  ;;  %v2265_v0 = vmul.f32 %v3529_v24, %v4622_v56  ;;  %v2096_v56 = vpop.xlane.xlu1 %2095 }
 0x2ff   : > { %3548 = vrcp.f32 %v2211_v59  ;;  %v2456_v47 = vrot.slane %v2442_v35, %v4170_v19  ;;  %v3533_v53 = vpop.eup %3532  ;;  %v2267_v54 = vmul.f32 %v3531_v26, %v4628_v46  ;;  %v2171_v46 = vrot.slane %v2096_v56, %v4225_v7 }
 0x300   : > { %3550 = vrcp.f32 %v2215_v40  ;;  %v2269_v33 = vmul.f32 %v3533_v53, %v4634_v51  ;;  %v4864_v42 = vmul.f32 0.33, %v2265_v0  ;;  %v2191_v7 = vrot.slane %v2096_v56, %v4243_v16 }
 0x301   : > { %3552 = vrcp.f32 %v2219_v44  ;;  %v2457_v49 = vcombine.low %v2449_v20, %v2456_v47  ;;  %v3535_v22 = vpop.eup %3534  ;;  %v2360_v35 = vcombine.low %v2265_v0, %v2267_v54  ;;  %v4868_v24 = vmul.f32 0.33, %v2267_v54 }
 0x302   : > { %3554 = vrcp.f32 %v2223_v25  ;;  %v2175_v20 = vrot.slane %v2096_v56, %v4228_v8  ;;  %v2179_v44 = vrot.slane %v2096_v56, %v4231_v10  ;;  %v2183_v25 = vrot.slane %v2096_v56, %v4234_v11 }
 0x303   : > { %v3537_v40 = vpop.eup %3536  ;;  %3556 = vrcp.f32 %v2227_v52  ;;  %2561 = vst.msk [vmem:[%s4872_s17 + $0x8] sm:$0xff] %vm503_vm3, %v2457_v49  ;;  %v2370_v26 = vrot.slane %v2360_v35, %v4170_v19  ;;  %v2187_v52 = vrot.slane %v2096_v56, %v4239_v14  ;;  %v2195_v0 = vrot.slane %v2096_v56, %v4247_v18 }
 0x304   : > { %v3539_v51 = vpop.eup %3538  ;;  %3558 = vrcp.f32 %v2231_v39  ;;  %v2199_v54 = vrot.slane %v2096_v56, %v4250_v21  ;;  %v2271_v39 = vmul.f32 %v3535_v22, %v4642_v15  ;;  %v2273_v8 = vmul.f32 %v3537_v40, %v4650_v27 }
 0x305   : > { %v3541_v47 = vpop.eup %3540  ;;  %3560 = vrcp.f32 %v2171_v46  ;;  %v2275_v11 = vmul.f32 %v3539_v51, %v4656_v61  ;;  %v2566_v59 = vmul.f32 0.33, %v2269_v33  ;;  %v5302_v60 = vpack.c.bf16 %v4832_v23, %v4832_v23 }
 0x306   : > { %v3543_v53 = vpop.eup %3542  ;;  %3562 = vrcp.f32 %v2175_v20  ;;  %v2277_v49 = vmul.f32 %v3541_v47, %v4659_v38  ;;  %v2361_v18 = vcombine.low %v2269_v33, %v2271_v39 }
 0x307   : > { %v3545_v10 = vpop.eup %3544  ;;  %v2279_v14 = vmul.f32 %v3543_v53, %v4663_v48  ;;  %3564 = vrcp.f32 %v2179_v44  ;;  %v2362_v15 = vcombine.low %v2273_v8, %v2275_v11 }
 0x308   : > { %v3547_v35 = vpop.eup %3546  ;;  %v2313_v16 = vmul.f32 %v3545_v10, %v4665_v37  ;;  %3566 = vrcp.f32 %v2183_v25  ;;  %v2377_v38 = vrot.slane %v2361_v18, %v4170_v19  ;;  %v2569_v18 = vmul.f32 0.33, %v2275_v11  ;;  %v5295_v11 = vld [vmem:[#allocation34_spill] sm:$0xff] }
 0x309   : > { %v3549_v21 = vpop.eup %3548  ;;  %v2315_v56 = vmul.f32 %v3547_v35, %v4670_v28  ;;  %v2363_v27 = vcombine.low %v2277_v49, %v2279_v14  ;;  %3568 = vrcp.f32 %v2187_v52  ;;  %v2567_v35 = vmul.f32 0.33, %v2271_v39 }
 0x30a   : > { %v3551_v22 = vpop.eup %3550  ;;  %v2317_v40 = vmul.f32 %v3549_v21, %v4672_v36  ;;  %v2588_v61 = vmul.f32 0.33, %v2313_v16  ;;  %3570 = vrcp.f32 %v2191_v7  ;;  %v2392_v10 = vcombine.low %v2370_v26, %v2377_v38 }
 0x30b   : > { %v3553_v48 = vpop.eup %3552  ;;  %v2319_v46 = vmul.f32 %v3551_v22, %v4677_v63  ;;  %v2507_v37 = vcombine.low %v2313_v16, %v2315_v56  ;;  %v2589_v51 = vmul.f32 0.33, %v2315_v56  ;;  %3572 = vrcp.f32 %v2195_v0 }
 0x30c   : > { %v4894_v33 = vpop.eup %3554  ;;  %v4897_v28 = vmul.f32 %v3553_v48, %v4680_v12  ;;  %v4899_v20 = vmul.f32 0.33, %v2317_v40  ;;  %v4902_v44 = vadd.f32 %v2588_v61, %v4773_v6  ;;  %3574 = vrcp.f32 %v2199_v54 }
 0x30d   : > { %v4904_v36 = vpop.eup %3556  ;;  %v2508_v25 = vcombine.low %v2317_v40, %v2319_v46  ;;  %v4907_v47 = vrot.slane %v2507_v37, %v4170_v19  ;;  %v4909_v63 = vmul.f32 0.33, %v2319_v46  ;;  %v4912_v52 = vadd.f32 %v2589_v51, %v4775_v3  ;;  %v5296_v37 = vld [vmem:[#allocation36_spill] sm:$0xff] }
 0x30e   : > { %v4914_v7 = vpop.eup %3558  ;;  %v2384_v12 = vrot.slane %v2362_v15, %v4170_v19  ;;  %v2391_v53 = vrot.slane %v2363_v27, %v4170_v19  ;;  %v2568_v16 = vmul.f32 0.33, %v2273_v8  ;;  %v2400_v22 = vrot.slane %v2392_v10, %v4170_v19 }
 0x30f   : > { %v4919_v0 = vrot.slane %v2508_v25, %v4170_v19  ;;  %v3561_v21 = vpop.eup %3560  ;;  %v2570_v40 = vmul.f32 0.33, %v2277_v49  ;;  %v2571_v61 = vmul.f32 0.33, %v2279_v14  ;;  %v2596_v26 = vadd.f32 %v4864_v42, %v4773_v6 }
 0x310   : > { %v2393_v56 = vcombine.low %v2384_v12, %v2391_v53  ;;  %v3563_v48 = vpop.eup %3562  ;;  %v2297_v15 = vmul.f32 %v3561_v21, %v4695_v45  ;;  %v2597_v39 = vadd.f32 %v4868_v24, %v4775_v3  ;;  %v2598_v49 = vadd.f32 %v2566_v59, %v4777_v1  ;;  %v5297_v12 = vld [vmem:[#allocation37_spill] sm:$0xff] }
 0x311   : > { %v3565_v8 = vpop.eup %3564  ;;  %v2299_v27 = vmul.f32 %v3563_v48, %v5295_v11  ;;  %v2599_v14 = vadd.f32 %v2567_v35, %v4780_v30  ;;  %v2600_v25 = vadd.f32 %v2568_v16, %v4782_v34  ;;  %v2601_v42 = vadd.f32 %v2569_v18, %v4784_v5  ;;  %v5298_v35 = vld [vmem:[#allocation38_spill] sm:$0xff] }
 0x312   : > { %v2407_v38 = vrot.slane %v2393_v56, %v4170_v19  ;;  %v3567_v46 = vpop.eup %3566  ;;  %v2301_v51 = vmul.f32 %v3565_v8, %v5296_v37  ;;  %v2580_v45 = vmul.f32 0.33, %v2297_v15  ;;  %v2602_v18 = vadd.f32 %v2570_v40, %v4787_v32 }
 0x313   : > { %v3569_v24 = vpop.eup %3568  ;;  %v2303_v53 = vmul.f32 %v3567_v46, %v5297_v12  ;;  %v2458_v10 = vcombine.low %v2297_v15, %v2299_v27  ;;  %v2581_v21 = vmul.f32 0.33, %v2299_v27  ;;  %v2628_v46 = vpack.c.bf16 %v2596_v26, %v2596_v26 }
 0x314   : > { %v2408_v56 = vcombine.low %v2400_v22, %v2407_v38  ;;  %v4937_v59 = vpop.eup %3570  ;;  %v4940_v48 = vmul.f32 %v3569_v24, %v5298_v35  ;;  %v4942_v8 = vmul.f32 0.33, %v2301_v51  ;;  %v4945_v16 = vadd.f32 %v2580_v45, %v4773_v6 }
 0x315   : > { %v4948_v11 = vpop.eup %3572  ;;  %v2459_v15 = vcombine.low %v2301_v51, %v2303_v53  ;;  %v4951_v27 = vrot.slane %v2458_v10, %v4170_v19  ;;  %v4953_v22 = vmul.f32 0.33, %v2303_v53  ;;  %v4956_v38 = vadd.f32 %v2581_v21, %v4775_v3 }
 0x316   : > { %2560 = vst.msk [vmem:[%s4872_s17] sm:$0xff] %vm503_vm3, %v2408_v56  ;;  %v2603_v6 = vadd.f32 %v2571_v61, %v4789_v31  ;;  %v2629_v37 = vpack.c.bf16 %v2597_v39, %v2597_v39  ;;  %v2630_v40 = vpack.c.bf16 %v2598_v49, %v2598_v49  ;;  %v3575_v45 = vpop.eup %3574  ;;  %v2631_v24 = vpack.c.bf16 %v2599_v14, %v2599_v14 }
 0x317   : > { %v2475_v51 = vrot.slane %v2459_v15, %v4170_v19  ;;  %v2632_v12 = vpack.c.bf16 %v2600_v25, %v2600_v25  ;;  %v2633_v10 = vpack.c.bf16 %v2601_v42, %v2601_v42  ;;  %v2634_v53 = vpack.c.bf16 %v2602_v18, %v2602_v18 }
 0x318   : > { %v2635_v35 = vpack.c.bf16 %v2603_v6, %v2603_v6  ;;  %v2672_v3 = vunpack.c.l.b16 %v2628_v46  ;;  %v2673_v21 = vunpack.c.l.b16 %v2629_v37  ;;  %v2674_v56 = vunpack.c.l.b16 %v2630_v40 }
 0x319   : > { %v2490_v54 = vcombine.low %v4951_v27, %v2475_v51  ;;  %v2675_v43 = vunpack.c.l.b16 %v2631_v24  ;;  %v2676_v61 = vunpack.c.l.b16 %v2632_v12  ;;  %v2677_v26 = vunpack.c.l.b16 %v2633_v10 }
 0x31a   : > { %v2678_v39 = vunpack.c.l.b16 %v2634_v53  ;;  %v2679_v49 = vunpack.c.l.b16 %v2635_v35  ;;  %v2680_v17 = vrot.slane %v2673_v21, 7  ;;  %v2683_v41 = vrot.slane %v2674_v56, 6 }
 0x31b   : > { %v2686_v55 = vrot.slane %v2675_v43, 5  ;;  %v2689_v15 = vrot.slane %v2676_v61, 4  ;;  %v2643_v14 = vpack.c.bf16 %v4846_v2, %v4846_v2  ;;  %v2692_v42 = vrot.slane %v2677_v26, 3 }
 0x31c   : > { %v2682_v25 = vsel %vm2681_vm5, %v2680_v17, %v2672_v3  ;;  %v2695_v18 = vrot.slane %v2678_v39, 2  ;;  %v2698_v6 = vrot.slane %v2679_v49, 1  ;;  %v2757_v46 = vunpack.c.l.b16 %v2636_v29 }
 0x31d   : > { %v2685_v27 = vsel %vm2684_vm6, %v2683_v41, %v2682_v25  ;;  %v2758_v37 = vunpack.c.l.b16 %v2637_v9  ;;  %v5299_v43 = vpack.c.bf16 %v4822_v62, %v4822_v62  ;;  %v5300_v17 = vpack.c.bf16 %v4825_v57, %v4825_v57 }
 0x31e   : > { %v2688_v2 = vsel %vm2687_vm7, %v2686_v55, %v2685_v27  ;;  %v5301_v41 = vpack.c.bf16 %v4829_v13, %v4829_v13  ;;  %v2762_v29 = vunpack.c.l.b16 %v5302_v60  ;;  %v5303_v62 = vpack.c.bf16 %v4843_v4, %v4843_v4  ;;  %v5304_v4 = vld [vmem:[#allocation39_spill] sm:$0xff] }
 0x31f   : > { %v2759_v40 = vunpack.c.l.b16 %v5299_v43  ;;  %v2760_v51 = vunpack.c.l.b16 %v5300_v17  ;;  %v2691_v58 = vsel %vm2690_vm8, %v2689_v15, %v2688_v2  ;;  %v2764_v12 = vunpack.c.l.b16 %v2643_v14  ;;  %v5305_v14 = vld [vmem:[#allocation40_spill] sm:$0xff] }
 0x320   : > { %v2761_v24 = vunpack.c.l.b16 %v5301_v41  ;;  %v2763_v9 = vunpack.c.l.b16 %v5303_v62  ;;  %v2765_v55 = vrot.slane %v2758_v37, 7  ;;  %v2694_v10 = vsel %vm2693_vm9, %v2692_v42, %v2691_v58  ;;  %v5306_v42 = vld [vmem:[#allocation41_spill] sm:$0xff] }
 0x321   : > { %v2767_v57 = vrot.slane %v2759_v40, 6  ;;  %v2769_v53 = vrot.slane %v2760_v51, 5  ;;  %v2697_v13 = vsel %vm2696_vm10, %v2695_v18, %v2694_v10  ;;  %v2773_v21 = vrot.slane %v2762_v29, 3 }
 0x322   : > { %v2771_v35 = vrot.slane %v2761_v24, 4  ;;  %v2766_v3 = vsel %vm2681_vm5, %v2765_v55, %v2757_v46  ;;  %v2775_v23 = vrot.slane %v2763_v9, 2  ;;  %v2700_v56 = vsel %vm2699_vm11, %v2698_v6, %v2697_v13 }
 0x323   : > { %v2768_v61 = vsel %vm2684_vm6, %v2767_v57, %v2766_v3  ;;  %v2777_v26 = vrot.slane %v2764_v12, 1  ;;  %v2307_v39 = vmul.f32 %v4937_v59, %v5304_v4  ;;  %v2701_v49 = vpack.c.b16 %v2700_v56, %v2700_v56 }
 0x324   : > { %v2770_v15 = vsel %vm2687_vm7, %v2769_v53, %v2768_v61  ;;  %v2309_v25 = vmul.f32 %v4948_v11, %v5305_v14  ;;  %v2311_v18 = vmul.f32 %v3575_v45, %v5306_v42  ;;  %v2498_v6 = vrot.slane %v2490_v54, %v4170_v19 }
 0x325   : > { %v2772_v27 = vsel %vm2690_vm8, %v2771_v35, %v2770_v15  ;;  %v2460_v46 = vcombine.low %v4940_v48, %v2307_v39  ;;  %v2584_v37 = vmul.f32 0.33, %v4940_v48  ;;  %3318 = vmatmul.mubr.msk.bf16.vlgmr.msra.gmra.mrb[8].mxu0 %vm503_vm3, %v2701_v49  ;;  %v2585_v40 = vmul.f32 0.33, %v2307_v39  ;;  %v5308_v35 = vld [vmem:[#allocation24_spill] sm:$0xff] }
 0x326   : > { %v2774_v59 = vsel %vm2693_vm9, %v2773_v21, %v2772_v27  ;;  %v2461_v43 = vcombine.low %v2309_v25, %v2311_v18  ;;  %v2586_v2 = vmul.f32 0.33, %v2309_v25  ;;  %3328 = vmatpush3.bf16.msra.mxu0 %v4794_v50  ;;  %v5307_v11 = vmov 0.0  }
 0x327   : > { %v2776_v17 = vsel %vm2696_vm10, %v2775_v23, %v2774_v59  ;;  %3329 = vmatprep.mubr.msk.bf16.mxu0 %vm3827_vm0, %v5307_v11  ;;  %v2482_v45 = vrot.slane %v2460_v46, %v4170_v19  ;;  %v2587_v51 = vmul.f32 0.33, %v2311_v18  ;;  %v2614_v54 = vadd.f32 %v4942_v8, %v4777_v1 }
 0x328   : > { %v2778_v48 = vsel %vm2699_vm11, %v2777_v26, %v2776_v17  ;;  %v2489_v41 = vrot.slane %v2461_v43, %v4170_v19  ;;  %v2615_v24 = vadd.f32 %v4953_v22, %v4780_v30  ;;  %v2616_v60 = vadd.f32 %v2584_v37, %v4782_v34  ;;  %v5309_v37 = vld [vmem:[#allocation33_spill] sm:$0xff] }
 0x329   : > { %v2779_v29 = vpack.c.b16 %v2778_v48, %v2778_v48  ;;  %v2617_v50 = vadd.f32 %v2585_v40, %v4784_v5  ;;  %v2618_v58 = vadd.f32 %v2586_v2, %v4787_v32  ;;  %v2619_v62 = vadd.f32 %v2587_v51, %v4789_v31  ;;  %v5310_v40 = vld [vmem:[#allocation35_spill] sm:$0xff]  ;;  %v5311_v2 = vld [vmem:[#allocation32_spill] sm:$0xff] }
 0x32a   : > { %v2491_v9 = vcombine.low %v2482_v45, %v2489_v41  ;;  %v2644_v8 = vpack.c.bf16 %v4945_v16, %v4945_v16  ;;  %v2645_v12 = vpack.c.bf16 %v4956_v38, %v4956_v38  ;;  %v2646_v55 = vpack.c.bf16 %v2614_v54, %v2614_v54 }
 0x32b   : > { %3324 = vmatmul.mubr.msk.bf16.vlgmr.msra.gmra.mrb[8].mxu1 %vm503_vm3, %v2779_v29  ;;  %v2647_v22 = vpack.c.bf16 %v2615_v24, %v2615_v24  ;;  %v2648_v10 = vpack.c.bf16 %v2616_v60, %v2616_v60  ;;  %v2649_v57 = vpack.c.bf16 %v2617_v50, %v2617_v50  ;;  %v2650_v53 = vpack.c.bf16 %v2618_v58, %v2618_v58 }
 0x32c   : > { %3334 = vmatpush3.bf16.msra.mxu1 %v5308_v35  ;;  %3335 = vmatprep.mubr.msk.bf16.mxu1 %vm3827_vm0, %v5307_v11  ;;  %v2505_v13 = vrot.slane %v2491_v9, %v4170_v19  ;;  %v2651_v3 = vpack.c.bf16 %v2619_v62, %v2619_v62  ;;  %v2834_v21 = vunpack.c.l.b16 %v2644_v8  ;;  %v2835_v16 = vunpack.c.l.b16 %v2645_v12 }
 0x32d   : > { %v2836_v23 = vunpack.c.l.b16 %v2646_v55  ;;  %v2837_v38 = vunpack.c.l.b16 %v2647_v22  ;;  %v2838_v56 = vunpack.c.l.b16 %v2648_v10  ;;  %v2839_v61 = vunpack.c.l.b16 %v2649_v57 }
 0x32e   : > { %v2506_v26 = vcombine.low %v2498_v6, %v2505_v13  ;;  %v2840_v4 = vunpack.c.l.b16 %v2650_v53  ;;  %v2841_v39 = vunpack.c.l.b16 %v2651_v3  ;;  %v2842_v49 = vrot.slane %v2835_v16, 7 }
 0x32f   : > { %v2844_v15 = vrot.slane %v2836_v23, 6  ;;  %v2846_v14 = vrot.slane %v2837_v38, 5  ;;  %v2848_v25 = vrot.slane %v2838_v56, 4  ;;  %v2850_v42 = vrot.slane %v2839_v61, 3 }
 0x330   : > { %v2843_v18 = vsel %vm2681_vm5, %v2842_v49, %v2834_v21  ;;  %v2852_v27 = vrot.slane %v2840_v4, 2  ;;  %v2854_v46 = vrot.slane %v2841_v39, 1  ;;  %v2323_v59 = vmul.f32 %v4894_v33, %v5309_v37  ;;  %2562 = vst.msk [vmem:[%s4872_s17 + $0x10] sm:$0xff] %vm503_vm3, %v2506_v26 }
 0x331   : > { %v2845_v43 = vsel %vm2684_vm6, %v2844_v15, %v2843_v18  ;;  %v2325_v6 = vmul.f32 %v4904_v36, %v5310_v40  ;;  %v2327_v17 = vmul.f32 %v4914_v7, %v5311_v2  ;;  %v5312_v11 = vcombine.low %v4907_v47, %v4919_v0 }
 0x332   : > { %v2847_v51 = vsel %vm2687_vm7, %v2846_v14, %v2845_v43  ;;  %v2509_v54 = vcombine.low %v4897_v28, %v2323_v59  ;;  %v2592_v33 = vmul.f32 0.33, %v4897_v28  ;;  %v2593_v48 = vmul.f32 0.33, %v2323_v59 }
 0x333   : > { %v2547_v45 = vrot.slane %v5312_v11, %v4170_v19  ;;  %v2849_v41 = vsel %vm2690_vm8, %v2848_v25, %v2847_v51  ;;  %v2510_v24 = vcombine.low %v2325_v6, %v2327_v17  ;;  %v2594_v60 = vmul.f32 0.33, %v2325_v6 }
 0x334   : > { %v2595_v36 = vmul.f32 0.33, %v2327_v17  ;;  %v2851_v29 = vsel %vm2693_vm9, %v2850_v42, %v2849_v41  ;;  %v2531_v7 = vrot.slane %v2509_v54, %v4170_v19  ;;  %v2622_v47 = vadd.f32 %v4899_v20, %v4777_v1 }
 0x335   : > { %v2623_v0 = vadd.f32 %v4909_v63, %v4780_v30  ;;  %v2853_v50 = vsel %vm2696_vm10, %v2852_v27, %v2851_v29  ;;  %v2538_v28 = vrot.slane %v2510_v24, %v4170_v19  ;;  %v2624_v58 = vadd.f32 %v2592_v33, %v4782_v34 }
 0x336   : > { %v2625_v62 = vadd.f32 %v2593_v48, %v4784_v5  ;;  %v2855_v9 = vsel %vm2699_vm11, %v2854_v46, %v2853_v50  ;;  %v2626_v8 = vadd.f32 %v2594_v60, %v4787_v32  ;;  %v2627_v12 = vadd.f32 %v2595_v36, %v4789_v31 }
 0x337   : > { %v2652_v1 = vpack.c.bf16 %v4902_v44, %v4902_v44  ;;  %v2856_v20 = vpack.c.b16 %v2855_v9, %v2855_v9  ;;  %v2540_v55 = vcombine.low %v2531_v7, %v2538_v28  ;;  %v2653_v30 = vpack.c.bf16 %v4912_v52, %v4912_v52 }
 0x338   : > { %v2654_v63 = vpack.c.bf16 %v2622_v47, %v2622_v47  ;;  %v2655_v22 = vpack.c.bf16 %v2623_v0, %v2623_v0  ;;  %v2656_v10 = vpack.c.bf16 %v2624_v58, %v2624_v58  ;;  %v2657_v34 = vpack.c.bf16 %v2625_v62, %v2625_v62 }
 0x339   : > { %v2658_v57 = vpack.c.bf16 %v2626_v8, %v2626_v8  ;;  %3330 = vmatmul.mubr.msk.bf16.vlgmr.msra.gmra.mrb[12].mxu0 %vm503_vm3, %v2856_v20  ;;  %v2554_v5 = vrot.slane %v2540_v55, %v4170_v19  ;;  %v2659_v32 = vpack.c.bf16 %v2627_v12, %v2627_v12  ;;  %v2912_v31 = vunpack.c.l.b16 %v2653_v30 }
 0x33a   : > { %v2913_v53 = vunpack.c.l.b16 %v2654_v63  ;;  %v2914_v35 = vunpack.c.l.b16 %v2655_v22  ;;  %v2915_v44 = vunpack.c.l.b16 %v2656_v10  ;;  %v2911_v3 = vunpack.c.l.b16 %v2652_v1 }
 0x33b   : > { %v2555_v13 = vcombine.low %v2547_v45, %v2554_v5  ;;  %v2916_v21 = vunpack.c.l.b16 %v2657_v34  ;;  %v2919_v16 = vrot.slane %v2912_v31, 7  ;;  %v2917_v52 = vunpack.c.l.b16 %v2658_v57 }
 0x33c   : > { %v2921_v23 = vrot.slane %v2913_v53, 6  ;;  %v2918_v38 = vunpack.c.l.b16 %v2659_v32  ;;  %v2923_v61 = vrot.slane %v2914_v35, 5  ;;  %v2925_v26 = vrot.slane %v2915_v44, 4 }
 0x33d   : > { %v2920_v56 = vsel %vm2681_vm5, %v2919_v16, %v2911_v3  ;;  %2563 = vst.msk [vmem:[%s4872_s17 + $0x18] sm:$0xff] %vm503_vm3, %v2555_v13  ;;  %v2927_v39 = vrot.slane %v2916_v21, 3  ;;  %v2929_v15 = vrot.slane %v2917_v52, 2 }
 0x33e   : > { %v2922_v19 = vsel %vm2684_vm6, %v2921_v23, %v2920_v56  ;;  %v2931_v25 = vrot.slane %v2918_v38, 1 }
 0x33f   : > { %v2924_v4 = vsel %vm2687_vm7, %v2923_v61, %v2922_v19 }
 0x340   : > { %v2926_v49 = vsel %vm2690_vm8, %v2925_v26, %v2924_v4 }
 0x341   : > { %v2928_v14 = vsel %vm2693_vm9, %v2927_v39, %v2926_v49 }
 0x342   : > { %v2930_v42 = vsel %vm2696_vm10, %v2929_v15, %v2928_v14 }
 0x343   : > { %v2932_v18 = vsel %vm2699_vm11, %v2931_v25, %v2930_v42 }
 0x344   : > { %v2933_v27 = vpack.c.b16 %v2932_v18, %v2932_v18 }
 0x346   : > { %3336 = vmatmul.mubr.msk.bf16.vlgmr.msra.gmra.mrb[12].mxu1 %vm503_vm3, %v2933_v27 }
 0x347   : > { %3709 = shalt.err (!%p3706_p3)
}
 0x348   : > { %s3710_s6 = scalar_lea.hbm %s5084_s29, 512  ;;  %s3714_s1 = scalar_lea.hbm %s5313_s23, 1024 }
 0x349   : > { %p3711_p10 = scmp.ne.s32.totalorder %s5084_s29, %s3710_s6  ;;  %p3715_p8 = scmp.lt.u32.totalorder %s5084_s29, %s5313_s23 }
 0x34a   : > { %p3716_p0 = scmp.lt.u32.totalorder %s3714_s1, %s3710_s6  ;;  %p3718_p1 = scmp.lt.u32.totalorder %s3710_s6, %s5084_s29 }
 0x34b   : > { %p3712_p9 = pnand %p3711_p10, %p5314_p6 }
 0x34c   : > { %p3717_p4 = por %p3716_p0, %p3715_p8 }
 0x34d   : > { %p3713_p12 = pneg %p3712_p9 }
 0x34e   : > { %p3719_p13 = por %p3718_p1, %p3717_p4 }
 0x350   : > { %p3720_p11 = pnand %p3719_p13, %p3713_p12 }
 0x352   : > { %3723 = shalt.err (!%p3720_p11)
}
 0x353   : > { %s3830_s7 = smov 128   ;;  %s3831_s24 = smov 8  }
 0x354   : > { %3348 = dma.vmem_to_hbm [thread:$0]  (%p5314_p6), %s5087_s20, 512, %s5084_s29, %s2990_s10, %s3830_s7, %s3830_s7, %s3831_s24  }
 0x355   : > { %s468_s12 = scalar_lea.vmem [#allocation10], %s4112_s0  ;;  %s5315_s16 = sld [smem:[#allocation44_spill]] }
 0x356   : > { %s3004_s0 = sshll.u32 %s468_s12, 4  ;;  %s2985_s20 = scalar_lea.sflag [#allocation4], %s4109_s15  ;;  %s5120_s0 = int_to_ptr.vmem [resolvable:$true] %s3004_s0 }
 0x357   : > { %s3724_s10 = scalar_lea.vmem %s5120_s0, 512  ;;  %s3832_s27 = smov [#allocation10]  }
 0x358   : > { %p3725_p2 = scmp.ne.s32.totalorder %s5120_s0, %s3724_s10  ;;  %s3728_s22 = sshll.u32 %s3832_s27, 4  ;;  %s3729_s22 = int_to_ptr.vmem [resolvable:$false] %s3728_s22 }
 0x359   : > { %s3730_s19 = scalar_lea.vmem %s3729_s22, 1024  ;;  %p3731_p3 = scmp.lt.s32.totalorder %s5120_s0, %s3729_s22 }
 0x35a   : > { %p3726_p5 = pnand %p3725_p2, %p5314_p6  ;;  %p3732_p10 = scmp.lt.s32.totalorder %s3730_s19, %s3724_s10 }
 0x35b   : > { %s5127_s29 = scalar_lea.hbm %s5315_s16, %s3273_s21 }
 0x35c   : > { %p3727_p7 = pneg %p3726_p5  ;;  %p3733_p9 = por %p3732_p10, %p3731_p3 }
 0x35e   : > { %p3734_p12 = pnand %p3733_p9, %p3727_p7 }
 0x3f8   : > { %v2743_v46 = vpop.f32.mrb[8].mxu0 }
 0x3f9   : > { %2980 = vst.msk [vmem:[%s468_s12] sm:$0xff] %vm903_vm1, %v2743_v46  ;;  %v3319_v37 = vpop.f32.mrb[9].mxu0 }
 0x3fa   : > { %v2746_v59 = vpop.f32.mrb[10].mxu0 }
 0x3fb   : > { %v3320_v43 = vpop.f32.mrb[11].mxu0 }
 0x3fe   : > { %v2820_v40 = vpop.f32.mrb[8].mxu1 }
 0x3ff   : > { %2981 = vst.msk [vmem:[%s468_s12 + $0x8] sm:$0xff] %vm903_vm1, %v2820_v40  ;;  %v3325_v6 = vpop.f32.mrb[9].mxu1 }
 0x400   : > { %v2823_v2 = vpop.f32.mrb[10].mxu1 }
 0x401   : > { %v3326_v17 = vpop.f32.mrb[11].mxu1 }
 0x40c   : > { %v2897_v11 = vpop.f32.mrb[12].mxu0 }
 0x40d   : > { %2982 = vst.msk [vmem:[%s468_s12 + $0x10] sm:$0xff] %vm903_vm1, %v2897_v11  ;;  %v3331_v45 = vpop.f32.mrb[13].mxu0 }
 0x40e   : > { %v2900_v51 = vpop.f32.mrb[14].mxu0 }
 0x40f   : > { %v3332_v54 = vpop.f32.mrb[15].mxu0 }
 0x419   : > { %v2974_v33 = vpop.f32.mrb[12].mxu1 }
 0x41a   : > { %2983 = vst.msk [vmem:[%s468_s12 + $0x18] sm:$0xff] %vm903_vm1, %v2974_v33  ;;  %v3337_v48 = vpop.f32.mrb[13].mxu1 }
 0x41b   : > { %v2977_v41 = vpop.f32.mrb[14].mxu1 }
 0x41c   : > { %3737 = shalt.err (!%p3734_p12)
}
 0x41d   : > { %s3738_s21 = scalar_lea.hbm %s5127_s29, 512  ;;  %s3742_s6 = scalar_lea.hbm %s5315_s16, 1024 }
 0x41e   : > { %p3739_p8 = scmp.ne.s32.totalorder %s5127_s29, %s3738_s21  ;;  %p3743_p1 = scmp.lt.u32.totalorder %s5127_s29, %s5315_s16 }
 0x41f   : > { %p3744_p13 = scmp.lt.u32.totalorder %s3742_s6, %s3738_s21  ;;  %p3746_p2 = scmp.lt.u32.totalorder %s3738_s21, %s5127_s29 }
 0x420   : > { %p3740_p0 = pnand %p3739_p8, %p5314_p6 }
 0x421   : > { %p3745_p11 = por %p3744_p13, %p3743_p1 }
 0x422   : > { %p3741_p4 = pneg %p3740_p0 }
 0x423   : > { %p3747_p5 = por %p3746_p2, %p3745_p11 }
 0x425   : > { %p3748_p7 = pnand %p3747_p5, %p3741_p4 }
 0x427   : > { %3751 = shalt.err (!%p3748_p7)
}
 0x428   : > { %3347 = dma.vmem_to_hbm [thread:$0]  (%p5314_p6), %s5120_s0, 512, %s5127_s29, %s2985_s20, %s3830_s7, %s3830_s7, %s3831_s24   ;;  %v3338_v24 = vpop.f32.mrb[15].mxu1 }
 0x429 PF: > { %s5316_s1 = sld [smem:[#allocation18_spill]]  ;;  %s5317_s11 = sld [smem:[#allocation23_spill]] }
 0x42a   : > { %s5318_s9 = sld [smem:[#allocation20_spill]] }
 0x42f   : > { %s3036_s12 = sand.u32 1, %s5316_s1   ;;  %p5319_p3 = scmp.ne.s32.totalorder %s5317_s11, 0 }
 0x430   : > { %p5320_p10 = scmp.ge.s32.totalorder %s5318_s9, 2  ;;  %s3037_s17 = scalar_lea.sflag [#allocation4], %s3036_s12 }
 0x432   : > { %p3365_p9 = pnand %p5320_p10, %p5319_p3 }
 0x434   : > { %3789 = dma.done.wait (!%p3365_p9), %s3037_s17, 512  }
 0x435   : > { %3791 = vsyncadd (!%p3365_p9), %s3037_s17, 4294966784  ;;  %s3046_s14 = scalar_lea.sflag [#allocation12], %s3036_s12 }
 0x436   : > { %3793 = dma.done.wait (!%p3365_p9), %s3046_s14, 512  }
 0x437   : > { %3795 = vsyncadd (!%p3365_p9), %s3046_s14, 4294966784  ;;  %s33_s29 = sadd.s32 1, %s5318_s9   ;;  %s5321_s15 = sld [smem:[#allocation19_spill]] }
 0x438   : > { %p30_p12 = scmp.ge.s32.totalorder %s33_s29, 4   ;;  %s5322_s26 = sld [smem:[#allocation22_spill]] }
 0x439   : > { %s5323_s7 = sld [smem:[#allocation21_spill]]  ;;  %s5324_s24 = smov %s3802_s25 }
 0x43a   : > { %s5326_s27 = smov %s3814_s28  ;;  %32 = sbr.rel (!%p30_p12) target bundleno = 17 (0x11), region = 149 }
 0x43d   : > { %s5325_s25 = smov %s5321_s15 }
 0x43f   : > { %s5327_s28 = smov %s5323_s7 }
 0x441   :  { %3051 = vsyncpa [#allocation3], 1 }
 0x442   :  { %3053 = vsyncpa [#allocation3 + $0x1], 1 }
 0x443   :  { %3054 = vsyncpa [#allocation6], 1 }
 0x444   :  { %3056 = vsyncpa [#allocation6 + $0x1], 1 }
 0x445   :  { %3057 = vsyncpa [#allocation9], 1 }
 0x446   :  { %3059 = vsyncpa [#allocation9 + $0x1], 1 }
 0x447   :  { %3060 = vsyncpa [#allocation4], 1 }
 0x448   :  { %3062 = vsyncpa [#allocation4 + $0x1], 1 }
 0x449   :  { %3063 = vsyncpa [#allocation12], 1 }
 0x44a   :  { %3065 = vsyncpa [#allocation12 + $0x1], 1 }

</bundles_post_ra>
